<compile_context>
chip_gen: v5e
topology: v5e:2x2
jax: 0.10.0
libtpu: 0.0.40
codegen_flags: <defaults>
</compile_context>

<pallas_src>
import jax
import jax.numpy as jnp
from jax.experimental import pallas as pl
from jax.experimental.pallas import tpu as pltpu


LAYER_SIZES = [10, 20, 10, 10, 250, 500, 28 * 28]  # PyTorch layer output dims
SMALL_PAD = 32          # padded width for the tiny layers (10/20-wide)
OUT_DIM = 28 * 28       # 784 (block last dim == full array dim, so allowed)


def _round_up(x, m):
    return (x + m - 1) // m * m


def decoder_kernel(x_ref, w1_ref, wsm_ref, w5_ref, w6_ref, w7_ref, b_ref, o_ref):
    f32 = jnp.float32
    bf16 = jnp.bfloat16

    def dense_relu(h, w, b):
        # bf16 operands on the MXU, f32 accumulation.  Bias add + ReLU in f32
        # (v5e VPU has no bf16), then one cast back to bf16 so the big
        # intermediates stay half-width in VMEM / vregs.
        y = jnp.dot(h, w, preferred_element_type=f32) + b
        return jnp.maximum(y, 0.0).astype(bf16)

    h = x_ref[...].astype(bf16)
    h = dense_relu(h, w1_ref[...], b_ref[0:1, :SMALL_PAD])   # (tb, 32)
    h = dense_relu(h, wsm_ref[0],  b_ref[1:2, :SMALL_PAD])   # (tb, 32)
    h = dense_relu(h, wsm_ref[1],  b_ref[2:3, :SMALL_PAD])   # (tb, 32)
    h = dense_relu(h, wsm_ref[2],  b_ref[3:4, :SMALL_PAD])   # (tb, 32)
    h = dense_relu(h, w5_ref[...], b_ref[4:5, :256])         # (tb, 256)
    h = dense_relu(h, w6_ref[...], b_ref[5:6, :512])         # (tb, 512)

    # Final layer is 784 wide (no pad columns), sigmoid only on real outputs.
    logits = jnp.dot(h, w7_ref[...], preferred_element_type=f32) + b_ref[6:7, :]
    # sigmoid(x) = 1 / (1 + exp(-x)); exp + approx reciprocal both run on the
    # EUP, and the bf16 store halves output writeback.
    sig = pl.reciprocal(1.0 + jnp.exp(-logits), approx=True)
    o_ref[...] = sig.astype(o_ref.dtype)


def init_decoder_params(latent_space_size, key):
    """Deterministic init matching PyTorch nn.Linear default:
    U(-1/sqrt(fan_in), 1/sqrt(fan_in)) for weight and bias.
    Weights are stored already transposed to (in, out)."""
    params = []
    in_dim = latent_space_size
    for out_dim in LAYER_SIZES:
        key, kw, kb = jax.random.split(key, 3)
        bound = 1.0 / jnp.sqrt(jnp.float32(in_dim))
        w = jax.random.uniform(kw, (in_dim, out_dim), jnp.float32, -bound, bound)
        b = jax.random.uniform(kb, (out_dim,), jnp.float32, -bound, bound)
        params.append((w, b))
        in_dim = out_dim
    return params


def _pad_2d(w, rows, cols):
    out = jnp.zeros((rows, cols), jnp.float32)
    return out.at[: w.shape[0], : w.shape[1]].set(w)


def pack_decoder_params(params, latent_space_size):
    """Zero-pad to lane-friendly shapes, cast weights to bf16, pack the small
    weights and all biases into single slabs (fewer tiny DMAs).  Pad weight
    rows/cols and pad bias entries are 0, so padded activations stay exactly 0
    through every ReLU and never pollute real outputs."""
    bf16 = jnp.bfloat16
    w1 = _pad_2d(params[0][0], latent_space_size, SMALL_PAD).astype(bf16)
    wsm = jnp.stack(
        [_pad_2d(params[k][0], SMALL_PAD, SMALL_PAD) for k in (1, 2, 3)]
    ).astype(bf16)
    w5 = _pad_2d(params[4][0], SMALL_PAD, 256).astype(bf16)
    w6 = _pad_2d(params[5][0], 256, 512).astype(bf16)
    w7 = _pad_2d(params[6][0], 512, OUT_DIM).astype(bf16)   # 784 wide, no pad cols
    bias = jnp.zeros((8, OUT_DIM), jnp.float32)             # 8 rows: sublane pad
    for k, (_, b) in enumerate(params):
        bias = bias.at[k, : b.shape[0]].set(b)              # pad entries stay 0
    return (w1, wsm, w5, w6, w7, bias)


def decoder_forward(x, packed, *, batch_tile=512, out_dtype=jnp.bfloat16):
    w1, wsm, w5, w6, w7, bias = packed
    batch, latent = x.shape

    # Adaptive batch tiling:
    #  * tile ~= ceil(batch / num_tiles) rounded to 16 (bf16 sublane packing),
    #    avoiding gross padding for batches just above a tile multiple;
    #  * force >= 2 grid steps when batch > 16 so ("parallel",) actually gives
    #    v7x's second TensorCore work.
    num_tiles = pl.cdiv(batch, batch_tile)
    if batch > 16:
        num_tiles = max(num_tiles, 2)
    tb = _round_up(pl.cdiv(batch, num_tiles), 16)
    b_pad = tb * num_tiles

    if b_pad != batch:
        x = jnp.pad(x, ((0, b_pad - batch), (0, 0)))
    x = x.astype(jnp.float32)

    padded_dims = [(latent, SMALL_PAD), (SMALL_PAD, SMALL_PAD),
                   (SMALL_PAD, SMALL_PAD), (SMALL_PAD, SMALL_PAD),
                   (SMALL_PAD, 256), (256, 512), (512, OUT_DIM)]
    flops = 2 * b_pad * sum(i * o for i, o in padded_dims)
    bytes_accessed = (
        int(x.size) * 4
        + sum(int(a.size) * a.dtype.itemsize for a in (w1, wsm, w5, w6, w7, bias))
        + b_pad * OUT_DIM * jnp.dtype(out_dtype).itemsize
    )
    cost = pl.CostEstimate(
        flops=flops, transcendentals=b_pad * OUT_DIM, bytes_accessed=bytes_accessed
    )

    out = pl.pallas_call(
        decoder_kernel,
        out_shape=jax.ShapeDtypeStruct((b_pad, OUT_DIM), out_dtype),
        grid=(num_tiles,),
        in_specs=[
            pl.BlockSpec((tb, latent), lambda i: (i, 0)),            # x: tiled
            pl.BlockSpec((latent, SMALL_PAD), lambda i: (0, 0)),     # w1: resident
            pl.BlockSpec((3, SMALL_PAD, SMALL_PAD), lambda i: (0, 0, 0)),  # w2-4
            pl.BlockSpec((SMALL_PAD, 256), lambda i: (0, 0)),        # w5
            pl.BlockSpec((256, 512), lambda i: (0, 0)),              # w6
            pl.BlockSpec((512, OUT_DIM), lambda i: (0, 0)),          # w7 (784 lanes)
            pl.BlockSpec((8, OUT_DIM), lambda i: (0, 0)),            # packed biases
        ],
        out_specs=pl.BlockSpec((tb, OUT_DIM), lambda i: (i, 0)),
        compiler_params=pltpu.CompilerParams(
            dimension_semantics=("parallel",),      # v7x: split batch over 2 TCs
            vmem_limit_bytes=32 * 1024 * 1024,      # safe on v5e/v6e/v7x
        ),
        cost_estimate=cost,
    )(x, w1, wsm, w5, w6, w7, bias)

    # No column slice needed (kernel writes exactly 784 lanes); only drop the
    # padded batch rows when padding was required.
    return out if b_pad == batch else out[:batch]


def decoder_ref(x, params):
    """Pure-JAX mixed-precision reference (bf16 matmul operands, f32 accum,
    f32 sigmoid)."""
    h = x.astype(jnp.float32)
    n = len(params)
    for i, (w, b) in enumerate(params):
        h = jnp.dot(h.astype(jnp.bfloat16), w.astype(jnp.bfloat16),
                    preferred_element_type=jnp.float32) + b[None, :]
        if i < n - 1:
            h = jnp.maximum(h, 0.0)
    return jax.nn.sigmoid(h)


if __name__ == "__main__":
    latent_space_size = 8
    batch = 2

    key = jax.random.PRNGKey(0)
    key, xkey = jax.random.split(key)
    x = jax.random.normal(xkey, (batch, latent_space_size), jnp.float32)

    params = init_decoder_params(latent_space_size, key)
    packed = pack_decoder_params(params, latent_space_size)

    out = decoder_forward(x, packed)
    out = jax.block_until_ready(out)

    ref = decoder_ref(x, params)
    assert out.shape == (batch, 28 * 28)
    assert out.dtype == jnp.bfloat16
    # bf16 output rounding of sigmoid values near 1.0 is ~4e-3; atol covers it.
    assert jnp.allclose(out.astype(jnp.float32), ref, atol=1e-2, rtol=0.0), \
        "mismatch vs reference"

    print("KERNEL_OK")
</pallas_src>

<mosaic_0001>
module attributes {stable_mosaic.version = 11 : i64} {
  func.func @decoder_kernel(%arg0: i32, %arg1: memref<16x8xf32, #tpu.memory_space<vmem>>, %arg2: memref<8x32xbf16, #tpu.memory_space<vmem>>, %arg3: memref<3x32x32xbf16, #tpu.memory_space<vmem>>, %arg4: memref<32x256xbf16, #tpu.memory_space<vmem>>, %arg5: memref<256x512xbf16, #tpu.memory_space<vmem>>, %arg6: memref<512x784xbf16, #tpu.memory_space<vmem>>, %arg7: memref<8x784xf32, #tpu.memory_space<vmem>>, %arg8: memref<16x784xbf16, #tpu.memory_space<vmem>>) attributes {dimension_semantics = [#tpu.dimension_semantics<parallel>], iteration_bounds = array<i64: 1>, scalar_prefetch = 0 : i64, scratch_operands = 0 : i64, tpu.core_type = #tpu.core_type<tc>, window_params = [{transform_indices = @transform_0, window_bounds = array<i64: 16, 8>}, {pipeline_mode = #tpu.pipeline_mode<synchronous>, transform_indices = @transform_1, window_bounds = array<i64: 8, 32>}, {pipeline_mode = #tpu.pipeline_mode<synchronous>, transform_indices = @transform_2, window_bounds = array<i64: 3, 32, 32>}, {pipeline_mode = #tpu.pipeline_mode<synchronous>, transform_indices = @transform_3, window_bounds = array<i64: 32, 256>}, {pipeline_mode = #tpu.pipeline_mode<synchronous>, transform_indices = @transform_4, window_bounds = array<i64: 256, 512>}, {pipeline_mode = #tpu.pipeline_mode<synchronous>, transform_indices = @transform_5, window_bounds = array<i64: 512, 784>}, {pipeline_mode = #tpu.pipeline_mode<synchronous>, transform_indices = @transform_6, window_bounds = array<i64: 8, 784>}, {transform_indices = @transform_7, window_bounds = array<i64: 16, 784>}]} {
    %c0 = arith.constant 0 : index
    %c0_0 = arith.constant 0 : index
    %0 = vector.load %arg1[%c0, %c0_0] : memref<16x8xf32, #tpu.memory_space<vmem>>, vector<16x8xf32>
    %1 = arith.truncf %0 : vector<16x8xf32> to vector<16x8xbf16>
    %c0_1 = arith.constant 0 : index
    %c0_2 = arith.constant 0 : index
    %2 = vector.load %arg2[%c0_1, %c0_2] : memref<8x32xbf16, #tpu.memory_space<vmem>>, vector<8x32xbf16>
    %c0_3 = arith.constant 0 : index
    %c0_4 = arith.constant 0 : index
    %3 = vector.load %arg7[%c0_3, %c0_4] : memref<8x784xf32, #tpu.memory_space<vmem>>, vector<1x32xf32>
    %cst = arith.constant dense<0.000000e+00> : vector<16x32xf32>
    %4 = tpu.matmul %1, %2, %cst {dimension_numbers = #tpu.dot_dimension_numbers<[1], [0], [0], [1], [0, 0, 1, 1], [], []>} : vector<16x8xbf16>, vector<8x32xbf16>, vector<16x32xf32> -> vector<16x32xf32>
    %5 = vector.broadcast %3 : vector<1x32xf32> to vector<16x32xf32>
    %6 = arith.addf %4, %5 : vector<16x32xf32>
    %cst_5 = arith.constant 0.000000e+00 : f32
    %7 = vector.broadcast %cst_5 : f32 to vector<16x32xf32>
    %8 = arith.maximumf %6, %7 : vector<16x32xf32>
    %9 = arith.truncf %8 : vector<16x32xf32> to vector<16x32xbf16>
    %c0_6 = arith.constant 0 : index
    %c0_7 = arith.constant 0 : index
    %c0_8 = arith.constant 0 : index
    %10 = vector.load %arg3[%c0_6, %c0_7, %c0_8] : memref<3x32x32xbf16, #tpu.memory_space<vmem>>, vector<1x32x32xbf16>
    %11 = vector.shape_cast %10 : vector<1x32x32xbf16> to vector<32x32xbf16>
    %c1 = arith.constant 1 : index
    %c0_9 = arith.constant 0 : index
    %12 = vector.load %arg7[%c1, %c0_9] : memref<8x784xf32, #tpu.memory_space<vmem>>, vector<1x32xf32>
    %cst_10 = arith.constant dense<0.000000e+00> : vector<16x32xf32>
    %13 = tpu.matmul %9, %11, %cst_10 {dimension_numbers = #tpu.dot_dimension_numbers<[1], [0], [0], [1], [0, 0, 1, 1], [], []>} : vector<16x32xbf16>, vector<32x32xbf16>, vector<16x32xf32> -> vector<16x32xf32>
    %14 = vector.broadcast %12 : vector<1x32xf32> to vector<16x32xf32>
    %15 = arith.addf %13, %14 : vector<16x32xf32>
    %cst_11 = arith.constant 0.000000e+00 : f32
    %16 = vector.broadcast %cst_11 : f32 to vector<16x32xf32>
    %17 = arith.maximumf %15, %16 : vector<16x32xf32>
    %18 = arith.truncf %17 : vector<16x32xf32> to vector<16x32xbf16>
    %c1_12 = arith.constant 1 : index
    %c0_13 = arith.constant 0 : index
    %c0_14 = arith.constant 0 : index
    %19 = vector.load %arg3[%c1_12, %c0_13, %c0_14] : memref<3x32x32xbf16, #tpu.memory_space<vmem>>, vector<1x32x32xbf16>
    %20 = vector.shape_cast %19 : vector<1x32x32xbf16> to vector<32x32xbf16>
    %c2 = arith.constant 2 : index
    %c0_15 = arith.constant 0 : index
    %21 = vector.load %arg7[%c2, %c0_15] : memref<8x784xf32, #tpu.memory_space<vmem>>, vector<1x32xf32>
    %cst_16 = arith.constant dense<0.000000e+00> : vector<16x32xf32>
    %22 = tpu.matmul %18, %20, %cst_16 {dimension_numbers = #tpu.dot_dimension_numbers<[1], [0], [0], [1], [0, 0, 1, 1], [], []>} : vector<16x32xbf16>, vector<32x32xbf16>, vector<16x32xf32> -> vector<16x32xf32>
    %23 = vector.broadcast %21 : vector<1x32xf32> to vector<16x32xf32>
    %24 = arith.addf %22, %23 : vector<16x32xf32>
    %cst_17 = arith.constant 0.000000e+00 : f32
    %25 = vector.broadcast %cst_17 : f32 to vector<16x32xf32>
    %26 = arith.maximumf %24, %25 : vector<16x32xf32>
    %27 = arith.truncf %26 : vector<16x32xf32> to vector<16x32xbf16>
    %c2_18 = arith.constant 2 : index
    %c0_19 = arith.constant 0 : index
    %c0_20 = arith.constant 0 : index
    %28 = vector.load %arg3[%c2_18, %c0_19, %c0_20] : memref<3x32x32xbf16, #tpu.memory_space<vmem>>, vector<1x32x32xbf16>
    %29 = vector.shape_cast %28 : vector<1x32x32xbf16> to vector<32x32xbf16>
    %c3 = arith.constant 3 : index
    %c0_21 = arith.constant 0 : index
    %30 = vector.load %arg7[%c3, %c0_21] : memref<8x784xf32, #tpu.memory_space<vmem>>, vector<1x32xf32>
    %cst_22 = arith.constant dense<0.000000e+00> : vector<16x32xf32>
    %31 = tpu.matmul %27, %29, %cst_22 {dimension_numbers = #tpu.dot_dimension_numbers<[1], [0], [0], [1], [0, 0, 1, 1], [], []>} : vector<16x32xbf16>, vector<32x32xbf16>, vector<16x32xf32> -> vector<16x32xf32>
    %32 = vector.broadcast %30 : vector<1x32xf32> to vector<16x32xf32>
    %33 = arith.addf %31, %32 : vector<16x32xf32>
    %cst_23 = arith.constant 0.000000e+00 : f32
    %34 = vector.broadcast %cst_23 : f32 to vector<16x32xf32>
    %35 = arith.maximumf %33, %34 : vector<16x32xf32>
    %36 = arith.truncf %35 : vector<16x32xf32> to vector<16x32xbf16>
    %c0_24 = arith.constant 0 : index
    %c0_25 = arith.constant 0 : index
    %37 = vector.load %arg4[%c0_24, %c0_25] : memref<32x256xbf16, #tpu.memory_space<vmem>>, vector<32x256xbf16>
    %c4 = arith.constant 4 : index
    %c0_26 = arith.constant 0 : index
    %38 = vector.load %arg7[%c4, %c0_26] : memref<8x784xf32, #tpu.memory_space<vmem>>, vector<1x256xf32>
    %cst_27 = arith.constant dense<0.000000e+00> : vector<16x256xf32>
    %39 = tpu.matmul %36, %37, %cst_27 {dimension_numbers = #tpu.dot_dimension_numbers<[1], [0], [0], [1], [0, 0, 1, 1], [], []>} : vector<16x32xbf16>, vector<32x256xbf16>, vector<16x256xf32> -> vector<16x256xf32>
    %40 = vector.broadcast %38 : vector<1x256xf32> to vector<16x256xf32>
    %41 = arith.addf %39, %40 : vector<16x256xf32>
    %cst_28 = arith.constant 0.000000e+00 : f32
    %42 = vector.broadcast %cst_28 : f32 to vector<16x256xf32>
    %43 = arith.maximumf %41, %42 : vector<16x256xf32>
    %44 = arith.truncf %43 : vector<16x256xf32> to vector<16x256xbf16>
    %c0_29 = arith.constant 0 : index
    %c0_30 = arith.constant 0 : index
    %45 = vector.load %arg5[%c0_29, %c0_30] : memref<256x512xbf16, #tpu.memory_space<vmem>>, vector<256x512xbf16>
    %c5 = arith.constant 5 : index
    %c0_31 = arith.constant 0 : index
    %46 = vector.load %arg7[%c5, %c0_31] : memref<8x784xf32, #tpu.memory_space<vmem>>, vector<1x512xf32>
    %cst_32 = arith.constant dense<0.000000e+00> : vector<16x512xf32>
    %47 = tpu.matmul %44, %45, %cst_32 {dimension_numbers = #tpu.dot_dimension_numbers<[1], [0], [0], [1], [0, 0, 1, 1], [], []>} : vector<16x256xbf16>, vector<256x512xbf16>, vector<16x512xf32> -> vector<16x512xf32>
    %48 = vector.broadcast %46 : vector<1x512xf32> to vector<16x512xf32>
    %49 = arith.addf %47, %48 : vector<16x512xf32>
    %cst_33 = arith.constant 0.000000e+00 : f32
    %50 = vector.broadcast %cst_33 : f32 to vector<16x512xf32>
    %51 = arith.maximumf %49, %50 : vector<16x512xf32>
    %52 = arith.truncf %51 : vector<16x512xf32> to vector<16x512xbf16>
    %c0_34 = arith.constant 0 : index
    %c0_35 = arith.constant 0 : index
    %53 = vector.load %arg6[%c0_34, %c0_35] : memref<512x784xbf16, #tpu.memory_space<vmem>>, vector<512x784xbf16>
    %cst_36 = arith.constant dense<0.000000e+00> : vector<16x784xf32>
    %54 = tpu.matmul %52, %53, %cst_36 {dimension_numbers = #tpu.dot_dimension_numbers<[1], [0], [0], [1], [0, 0, 1, 1], [], []>} : vector<16x512xbf16>, vector<512x784xbf16>, vector<16x784xf32> -> vector<16x784xf32>
    %c6 = arith.constant 6 : index
    %c0_37 = arith.constant 0 : index
    %55 = vector.load %arg7[%c6, %c0_37] : memref<8x784xf32, #tpu.memory_space<vmem>>, vector<1x784xf32>
    %56 = vector.broadcast %55 : vector<1x784xf32> to vector<16x784xf32>
    %57 = arith.addf %54, %56 : vector<16x784xf32>
    %cst_38 = arith.constant 0.000000e+00 : f32
    %58 = vector.broadcast %cst_38 : f32 to vector<16x784xf32>
    %59 = arith.subf %58, %57 : vector<16x784xf32>
    %60 = math.exp %59 : vector<16x784xf32>
    %cst_39 = arith.constant 1.000000e+00 : f32
    %61 = vector.broadcast %cst_39 : f32 to vector<16x784xf32>
    %62 = arith.addf %61, %60 : vector<16x784xf32>
    %63 = tpu.reciprocal %62 {approx = true} : vector<16x784xf32> -> vector<16x784xf32>
    %64 = arith.truncf %63 : vector<16x784xf32> to vector<16x784xbf16>
    %c0_40 = arith.constant 0 : index
    %c0_41 = arith.constant 0 : index
    %65 = vector.load %arg8[%c0_40, %c0_41] : memref<16x784xbf16, #tpu.memory_space<vmem>>, vector<16x784xbf16>
    tpu.vector_store %arg8[%c0_40, %c0_41], %64 {strides = array<i32>} : memref<16x784xbf16, #tpu.memory_space<vmem>>, vector<16x784xbf16>,
    return
  }
  func.func @transform_0(%arg0: i32) -> (i32, i32) {
    %c0_i32 = arith.constant 0 : i32
    %c0_i32_0 = arith.constant 0 : i32
    return %arg0, %c0_i32 : i32, i32
  }
  func.func @transform_1(%arg0: i32) -> (i32, i32) {
    %c0_i32 = arith.constant 0 : i32
    %c0_i32_0 = arith.constant 0 : i32
    %c0_i32_1 = arith.constant 0 : i32
    return %c0_i32, %c0_i32_0 : i32, i32
  }
  func.func @transform_2(%arg0: i32) -> (i32, i32, i32) {
    %c0_i32 = arith.constant 0 : i32
    %c0_i32_0 = arith.constant 0 : i32
    %c0_i32_1 = arith.constant 0 : i32
    %c0_i32_2 = arith.constant 0 : i32
    return %c0_i32, %c0_i32_0, %c0_i32_1 : i32, i32, i32
  }
  func.func @transform_3(%arg0: i32) -> (i32, i32) {
    %c0_i32 = arith.constant 0 : i32
    %c0_i32_0 = arith.constant 0 : i32
    %c0_i32_1 = arith.constant 0 : i32
    return %c0_i32, %c0_i32_0 : i32, i32
  }
  func.func @transform_4(%arg0: i32) -> (i32, i32) {
    %c0_i32 = arith.constant 0 : i32
    %c0_i32_0 = arith.constant 0 : i32
    %c0_i32_1 = arith.constant 0 : i32
    return %c0_i32, %c0_i32_0 : i32, i32
  }
  func.func @transform_5(%arg0: i32) -> (i32, i32) {
    %c0_i32 = arith.constant 0 : i32
    %c0_i32_0 = arith.constant 0 : i32
    %c0_i32_1 = arith.constant 0 : i32
    return %c0_i32, %c0_i32_0 : i32, i32
  }
  func.func @transform_6(%arg0: i32) -> (i32, i32) {
    %c0_i32 = arith.constant 0 : i32
    %c0_i32_0 = arith.constant 0 : i32
    %c0_i32_1 = arith.constant 0 : i32
    return %c0_i32, %c0_i32_0 : i32, i32
  }
  func.func @transform_7(%arg0: i32) -> (i32, i32) {
    %c0_i32 = arith.constant 0 : i32
    %c0_i32_0 = arith.constant 0 : i32
    return %arg0, %c0_i32 : i32, i32
  }
}

</mosaic_0001>

<bundles_post_ra>
// kernel: tpu_custom_call.1
= control target key start
LH: loop header
LB: loop body
LE: loop exit
PB: predicated region body
PF: predicated region fallthrough
CT: control target
= control target key end

     0   :  { %vm37_vm0 = vcmask 1043456   ;;  %s6193_s0 = inlined_call_operand.vmem [shape: f32[16,8], index: 0, kind: input, shape index: {}]   ;;  %s6194_s1 = inlined_call_operand.vmem [shape: bf16[8,32], index: 1, kind: input, shape index: {}]   ;;  %s6195_s2 = inlined_call_operand.vmem [shape: bf16[3,32,32], index: 2, kind: input, shape index: {}]   ;;  %s6196_s3 = inlined_call_operand.vmem [shape: bf16[32,256], index: 3, kind: input, shape index: {}]   ;;  %s6197_s4 = inlined_call_operand.vmem [shape: bf16[256,512], index: 4, kind: input, shape index: {}]   ;;  %s6198_s5 = inlined_call_operand.vmem [shape: bf16[512,784], index: 5, kind: input, shape index: {}]   ;;  %s6199_s6 = inlined_call_operand.vmem [shape: f32[8,784], index: 6, kind: input, shape index: {}]   ;;  %s6200_s7 = inlined_call_operand.hbm [shape: bf16[16,784], index: 7, kind: output, shape index: {}]  }
   0x1   :  { %v31_v0 = vld [vmem:[%s6194_s1] sm:$0xf]  ;;  %v29_v2 = vld [vmem:[%s6193_s0 + $0x8] sm:$0xff] }
   0x2   :  { %v28_v1 = vld [vmem:[%s6193_s0] sm:$0xff]  ;;  %v39_v3 = vsel %vm37_vm0, %v31_v0, 0 }
   0x3   :  { %v30_v4 = vpack.c.bf16 %v29_v2, %v28_v1 }
   0x4   :  { %12 = vsyncpa [#allocation3], 0  ;;  %48 = vmatpush.bf16.msra.mxu0 %v39_v3  ;;  %vm33_vm1 = vcmask 64512   ;;  %v3894_v5 = vld [vmem:[%s6195_s2 + $0x8] sm:$0xff]  ;;  %v3893_v6 = vld [vmem:[%s6195_s2] sm:$0xff]  ;;  %vm75_vm2 = vcmask 261120  }
   0x5   :  { %85 = vmatpush.bf16.msra.mxu1 %v3894_v5  ;;  %v32_v8 = vld [vmem:[%s6199_s6] ss:$0 sm:$0xff]  ;;  %v3896_v15 = vld [vmem:[%s6195_s2 + $0x18] sm:$0xff]  ;;  %v3895_v16 = vld [vmem:[%s6195_s2 + $0x10] sm:$0xff]  ;;  %vm2659_vm3 = vcmask 125952   ;;  %s2671_s9 = sshll.u32 %s6200_s7, 4  ;;  %s2672_s9 = int_to_ptr.hbm [resolvable:$true] %s2671_s9 }
   0x6   :  { %123 = vmatpush.bf16.msra.mxu2 %v3896_v15  ;;  %v62_v18 = vld [vmem:[%s6199_s6 + $0x1] ss:$0 sm:$0xff]  ;;  %v3898_v25 = vld [vmem:[%s6195_s2 + $0x28] sm:$0xff]  ;;  %v101_v28 = vld [vmem:[%s6199_s6 + $0x2] ss:$0 sm:$0xff]  ;;  %s4277_s10 = smov 448  }
   0x7   :  { %2683 = vmatmul.msk.bf16.vlgmr.msra.gmra.mxu0 %vm33_vm1, %v30_v4  ;;  %161 = vmatpush.bf16.msra.mxu3 %v3898_v25  ;;  %v3897_v26 = vld [vmem:[%s6195_s2 + $0x20] sm:$0xff]  ;;  %v2730_v35 = vld [vmem:[%s6196_s3 + $0x10] sm:$0xf]  ;;  %v3902_v36 = vld [vmem:[%s6196_s3 + $0x14] sm:$0xf0]  ;;  %s4278_s11 = smov 28  }
   0x8   :  { %v3901_v37 = vld [vmem:[%s6196_s3 + $0x14] sm:$0xf]  ;;  %v2731_v38 = vor.u32 %v3902_v36, %v2730_v35  ;;  %v2732_v39 = vld [vmem:[%s6196_s3 + $0x18] sm:$0xf0]  ;;  %v2722_v41 = vld [vmem:[%s6196_s3] sm:$0xf] }
   0x9   :  { %86 = vmatpush.bf16.msra.mxu1 %v3893_v6  ;;  %v2735_v40 = vor.u32 %v3901_v37, %v2732_v39  ;;  %v3900_v42 = vld [vmem:[%s6196_s3 + $0x4] sm:$0xf0]  ;;  %v3899_v43 = vld [vmem:[%s6196_s3 + $0x4] sm:$0xf]  ;;  %v2724_v45 = vld [vmem:[%s6196_s3 + $0x8] sm:$0xf0] }
   0xa   :  { %124 = vmatpush.bf16.msra.mxu2 %v3895_v16  ;;  %212 = vmatpush.bf16.msrb.mxu0 %v2731_v38  ;;  %v2723_v44 = vor.u32 %v3900_v42, %v2722_v41  ;;  %v2727_v46 = vor.u32 %v3899_v43, %v2724_v45  ;;  %v2853_v47 = vld [vmem:[%s6197_s4 + $0xe0] sm:$0xf]  ;;  %v3933_v48 = vld [vmem:[%s6197_s4 + $0xec] sm:$0xf0]  ;;  %v3931_v52 = vld [vmem:[%s6197_s4 + $0xe4] sm:$0xf] }
   0xb   :  { %162 = vmatpush.bf16.msra.mxu3 %v3897_v26  ;;  %v2981_v49 = vld [vmem:[%s6197_s4 + $0x1e0] sm:$0xf]  ;;  %v2854_v50 = vor.u32 %v3933_v48, %v2853_v47  ;;  %v3965_v51 = vld [vmem:[%s6197_s4 + $0x1ec] sm:$0xf0]  ;;  %v2855_v53 = vld [vmem:[%s6197_s4 + $0xf0] sm:$0xf0] }
   0xc   :  { %v2982_v54 = vor.u32 %v3965_v51, %v2981_v49  ;;  %v2858_v55 = vor.u32 %v3931_v52, %v2855_v53  ;;  %v3963_v56 = vld [vmem:[%s6197_s4 + $0x1e4] sm:$0xf]  ;;  %v2983_v57 = vld [vmem:[%s6197_s4 + $0x1f0] sm:$0xf0]  ;;  %v2837_v58 = vld [vmem:[%s6197_s4 + $0xc0] sm:$0xf] }
   0xd   :  { %226 = vmatpush.bf16.msrb.mxu1 %v2735_v40  ;;  %v2986_v59 = vor.u32 %v3963_v56, %v2983_v57  ;;  %v3929_v60 = vld [vmem:[%s6197_s4 + $0xcc] sm:$0xf0]  ;;  %v2965_v61 = vld [vmem:[%s6197_s4 + $0x1c0] sm:$0xf]  ;;  %v3927_v1 = vld [vmem:[%s6197_s4 + $0xc4] sm:$0xf] }
   0xe   :  { %213 = vmatpush.bf16.msrb.mxu0 %v2723_v44  ;;  %635 = vmatpush.bf16.msrb.mxu2 %v2854_v50  ;;  %v3961_v62 = vld [vmem:[%s6197_s4 + $0x1cc] sm:$0xf0]  ;;  %v2838_v63 = vor.u32 %v3929_v60, %v2837_v58  ;;  %v2839_v2 = vld [vmem:[%s6197_s4 + $0xd0] sm:$0xf0]  ;;  %v3959_v3 = vld [vmem:[%s6197_s4 + $0x1c4] sm:$0xf] }
   0xf   :  { %649 = vmatpush.bf16.msrb.mxu3 %v2982_v54  ;;  %v2966_v0 = vor.u32 %v3961_v62, %v2965_v61  ;;  %v2842_v4 = vor.u32 %v3927_v1, %v2839_v2  ;;  %v2967_v5 = vld [vmem:[%s6197_s4 + $0x1d0] sm:$0xf0]  ;;  %v2821_v6 = vld [vmem:[%s6197_s4 + $0xa0] sm:$0xf]  ;;  %v3951_v25 = vld [vmem:[%s6197_s4 + $0x184] sm:$0xf] }
  0x10   :  { %v2951_v15 = vld [vmem:[%s6197_s4 + $0x1b0] sm:$0xf0]  ;;  %v3915_v35 = vld [vmem:[%s6197_s4 + $0x64] sm:$0xf]  ;;  %v2773_v42 = vld [vmem:[%s6197_s4 + $0x40] sm:$0xf] }
  0x11   :  { %227 = vmatpush.bf16.msrb.mxu1 %v2727_v46  ;;  %v2935_v26 = vld [vmem:[%s6197_s4 + $0x190] sm:$0xf0]  ;;  %v3947_v37 = vld [vmem:[%s6197_s4 + $0x164] sm:$0xf]  ;;  %v3913_v43 = vld [vmem:[%s6197_s4 + $0x4c] sm:$0xf0] }
  0x12   :  { %663 = vmatpush.bf16.msra.mxu0 %v2858_v55  ;;  %636 = vmatpush.bf16.msrb.mxu2 %v2838_v63  ;;  %v2791_v36 = vld [vmem:[%s6197_s4 + $0x70] sm:$0xf0]  ;;  %v2901_v44 = vld [vmem:[%s6197_s4 + $0x140] sm:$0xf]  ;;  %v3945_v47 = vld [vmem:[%s6197_s4 + $0x14c] sm:$0xf0]  ;;  %v2774_v53 = vor.u32 %v3913_v43, %v2773_v42 }
  0x13   :  { %650 = vmatpush.bf16.msrb.mxu3 %v2966_v0  ;;  %v2919_v38 = vld [vmem:[%s6197_s4 + $0x170] sm:$0xf0]  ;;  %v2794_v41 = vor.u32 %v3915_v35, %v2791_v36  ;;  %v3911_v48 = vld [vmem:[%s6197_s4 + $0x44] sm:$0xf]  ;;  %v139_v52 = vld [vmem:[%s6199_s6 + $0x3] ss:$0 sm:$0xff]  ;;  %v2902_v54 = vor.u32 %v3945_v47, %v2901_v44 }
  0x14   :  { %v2922_v46 = vor.u32 %v3947_v37, %v2919_v38  ;;  %v2775_v49 = vld [vmem:[%s6197_s4 + $0x50] sm:$0xf0]  ;;  %v3943_v50 = vld [vmem:[%s6197_s4 + $0x144] sm:$0xf]  ;;  %v2757_v56 = vld [vmem:[%s6197_s4 + $0x20] sm:$0xf] }
  0x15   :  { %v2903_v51 = vld [vmem:[%s6197_s4 + $0x150] sm:$0xf0]  ;;  %v2778_v55 = vor.u32 %v3911_v48, %v2775_v49  ;;  %v3909_v57 = vld [vmem:[%s6197_s4 + $0x2c] sm:$0xf0]  ;;  %v2885_v58 = vld [vmem:[%s6197_s4 + $0x120] sm:$0xf] }
  0x16   :  { %664 = vmatpush.bf16.msra.mxu0 %v2842_v4  ;;  %v3941_v60 = vld [vmem:[%s6197_s4 + $0x12c] sm:$0xf0]  ;;  %v3907_v61 = vld [vmem:[%s6197_s4 + $0x24] sm:$0xf]  ;;  %v2759_v62 = vld [vmem:[%s6197_s4 + $0x30] sm:$0xf0]  ;;  %v2758_v1 = vor.u32 %v3909_v57, %v2757_v56 }
  0x17   :  { %v3939_v63 = vld [vmem:[%s6197_s4 + $0x124] sm:$0xf]  ;;  %v2887_v0 = vld [vmem:[%s6197_s4 + $0x130] sm:$0xf0]  ;;  %v2762_v4 = vor.u32 %v3907_v61, %v2759_v62  ;;  %v2845_v35 = vld [vmem:[%s6197_s4 + $0xc8] sm:$0xf] }
  0x18   :  { %v3930_v36 = vld [vmem:[%s6197_s4 + $0xd4] sm:$0xf0]  ;;  %v2973_v37 = vld [vmem:[%s6197_s4 + $0x1c8] sm:$0xf]  ;;  %v3960_v44 = vld [vmem:[%s6197_s4 + $0x1cc] sm:$0xf] }
  0x19   :  { %v2846_v38 = vor.u32 %v3930_v36, %v2845_v35  ;;  %v2829_v47 = vld [vmem:[%s6197_s4 + $0xa8] sm:$0xf]  ;;  %v3926_v48 = vld [vmem:[%s6197_s4 + $0xb4] sm:$0xf0]  ;;  %v3956_v56 = vld [vmem:[%s6197_s4 + $0x1ac] sm:$0xf] }
  0x1a   :  { %v2957_v49 = vld [vmem:[%s6197_s4 + $0x1a8] sm:$0xf]  ;;  %v2959_v57 = vld [vmem:[%s6197_s4 + $0x1b8] sm:$0xf0]  ;;  %v3908_v35 = vld [vmem:[%s6197_s4 + $0x2c] sm:$0xf] }
  0x1b   :  { %v2941_v61 = vld [vmem:[%s6197_s4 + $0x188] sm:$0xf] }
  0x84   :  { %v50_v7 = vpop.f32.mrf.mxu0 }
  0x85   :  { %v51_v9 = vadd.f32 %v50_v7, %v32_v8  ;;  %v3925_v7 = vld [vmem:[%s6197_s4 + $0xac] sm:$0xf0] }
  0x87   :  { %v55_v12 = vmax.f32 %v51_v9, 0.0  ;;  %v2949_v9 = vld [vmem:[%s6197_s4 + $0x1a0] sm:$0xf] }
  0x8c   :  { %v52_v10 = vpop.f32.mrf.mxu0 }
  0x8d   :  { %v53_v11 = vadd.f32 %v52_v10, %v32_v8  ;;  %v2970_v8 = vor.u32 %v3959_v3, %v2967_v5  ;;  %v3957_v10 = vld [vmem:[%s6197_s4 + $0x1ac] sm:$0xf0]  ;;  %v2886_v3 = vor.u32 %v3941_v60, %v2885_v58  ;;  %v2741_v5 = vld [vmem:[%s6197_s4] sm:$0xf]  ;;  %v2962_v58 = vor.u32 %v3956_v56, %v2959_v57  ;;  %v3922_v60 = vld [vmem:[%s6197_s4 + $0x94] sm:$0xf0] }
  0x8e   :  { %v2950_v16 = vor.u32 %v3957_v10, %v2949_v9  ;;  %v2869_v9 = vld [vmem:[%s6197_s4 + $0x100] sm:$0xf] }
  0x8f   :  { %v56_v13 = vmax.f32 %v53_v11, 0.0  ;;  %v3923_v11 = vld [vmem:[%s6197_s4 + $0xa4] sm:$0xf] }
  0x90   :  { %651 = vmatpush.bf16.msrb.mxu3 %v2950_v16  ;;  %v2871_v16 = vld [vmem:[%s6197_s4 + $0x110] sm:$0xf0] }
  0x91   :  { %v57_v14 = vpack.c.bf16 %v56_v13, %v55_v12  ;;  %v2822_v12 = vor.u32 %v3925_v7, %v2821_v6  ;;  %v2823_v13 = vld [vmem:[%s6197_s4 + $0xb0] sm:$0xf0]  ;;  %v3905_v6 = vld [vmem:[%s6197_s4 + $0xc] sm:$0xf0] }
  0x93   :  { %2692 = vmatmul.msk.bf16.vlgmr.msra.gmra.mxu1 %vm75_vm2, %v57_v14  ;;  %v3955_v14 = vld [vmem:[%s6197_s4 + $0x1a4] sm:$0xf]  ;;  %637 = vmatpush.bf16.msrb.mxu2 %v2822_v12 }
  0x94   :  { %677 = vmatpush.bf16.msra.mxu1 %v2986_v59  ;;  %v2906_v59 = vor.u32 %v3943_v50, %v2903_v51  ;;  %v3903_v12 = vld [vmem:[%s6197_s4 + $0x4] sm:$0xf]  ;;  %v2830_v50 = vor.u32 %v3926_v48, %v2829_v47  ;;  %v3958_v51 = vld [vmem:[%s6197_s4 + $0x1b4] sm:$0xf0]  ;;  %v3904_v47 = vld [vmem:[%s6197_s4 + $0xc] sm:$0xf] }
  0x95   :  { %v2751_v48 = vld [vmem:[%s6197_s4 + $0x18] sm:$0xf0] }
  0x98   :  { %678 = vmatpush.bf16.msra.mxu1 %v2970_v8  ;;  %v2890_v8 = vor.u32 %v3939_v63, %v2887_v0  ;;  %v3954_v63 = vld [vmem:[%s6197_s4 + $0x194] sm:$0xf0]  ;;  %v3920_v0 = vld [vmem:[%s6197_s4 + $0x8c] sm:$0xf] }
 0x110   :  { %v88_v17 = vpop.f32.mrf.mxu1 }
 0x111   :  { %v89_v19 = vadd.f32 %v88_v17, %v62_v18  ;;  %v2826_v17 = vor.u32 %v3923_v11, %v2823_v13  ;;  %v3937_v11 = vld [vmem:[%s6197_s4 + $0x10c] sm:$0xf0]  ;;  %v2743_v13 = vld [vmem:[%s6197_s4 + $0x10] sm:$0xf0] }
 0x113   :  { %v93_v22 = vmax.f32 %v89_v19, 0.0  ;;  %v3921_v19 = vld [vmem:[%s6197_s4 + $0x8c] sm:$0xf0]  ;;  %665 = vmatpush.bf16.msra.mxu0 %v2826_v17 }
 0x118   :  { %v90_v20 = vpop.f32.mrf.mxu1 }
 0x119   :  { %v91_v21 = vadd.f32 %v90_v20, %v62_v18  ;;  %v2805_v18 = vld [vmem:[%s6197_s4 + $0x80] sm:$0xf] }
 0x11a   :  { %v2933_v20 = vld [vmem:[%s6197_s4 + $0x180] sm:$0xf] }
 0x11b   :  { %v94_v23 = vmax.f32 %v91_v21, 0.0  ;;  %v2954_v21 = vor.u32 %v3955_v14, %v2951_v15  ;;  %v2742_v14 = vor.u32 %v3905_v6, %v2741_v5  ;;  %v3935_v15 = vld [vmem:[%s6197_s4 + $0x104] sm:$0xf]  ;;  %v2943_v5 = vld [vmem:[%s6197_s4 + $0x198] sm:$0xf0] }
 0x11d   :  { %v95_v24 = vpack.c.bf16 %v94_v23, %v93_v22  ;;  %v3953_v22 = vld [vmem:[%s6197_s4 + $0x18c] sm:$0xf0]  ;;  %v3919_v23 = vld [vmem:[%s6197_s4 + $0x84] sm:$0xf]  ;;  %679 = vmatpush.bf16.msra.mxu1 %v2954_v21 }
 0x11f   :  { %2705 = vmatmul.msk.bf16.vlgmr.msra.gmra.mxu2 %vm75_vm2, %v95_v24  ;;  %v2807_v24 = vld [vmem:[%s6197_s4 + $0x90] sm:$0xf0] }
 0x1a2   :  { %v126_v27 = vpop.f32.mrf.mxu2 }
 0x1a3   :  { %v127_v29 = vadd.f32 %v126_v27, %v101_v28  ;;  %v2806_v27 = vor.u32 %v3921_v19, %v2805_v18  ;;  %v2870_v19 = vor.u32 %v3937_v11, %v2869_v9  ;;  %v2925_v9 = vld [vmem:[%s6197_s4 + $0x168] sm:$0xf]  ;;  %v3950_v11 = vld [vmem:[%s6197_s4 + $0x174] sm:$0xf0] }
 0x1a5   :  { %v131_v32 = vmax.f32 %v127_v29, 0.0  ;;  %v2810_v29 = vor.u32 %v3919_v23, %v2807_v24  ;;  %638 = vmatpush.bf16.msrb.mxu2 %v2806_v27  ;;  %v2861_v23 = vld [vmem:[%s6197_s4 + $0xe8] sm:$0xf]  ;;  %v3934_v24 = vld [vmem:[%s6197_s4 + $0xf4] sm:$0xf0] }
 0x1a6   :  { %v3966_v27 = vld [vmem:[%s6197_s4 + $0x1f4] sm:$0xf0] }
 0x1a7   :  { %666 = vmatpush.bf16.msra.mxu0 %v2810_v29  ;;  %v2863_v29 = vld [vmem:[%s6197_s4 + $0xf8] sm:$0xf0] }
 0x1aa   :  { %v128_v30 = vpop.f32.mrf.mxu2 }
 0x1ab   :  { %v129_v31 = vadd.f32 %v128_v30, %v101_v28  ;;  %v2934_v28 = vor.u32 %v3953_v22, %v2933_v20  ;;  %v2789_v30 = vld [vmem:[%s6197_s4 + $0x60] sm:$0xf]  ;;  %667 = vmatpush.bf16.msra.mxu0 %v2794_v41  ;;  %v2746_v20 = vor.u32 %v3903_v12, %v2743_v13  ;;  %v2874_v22 = vor.u32 %v3935_v15, %v2871_v16  ;;  %v2847_v41 = vld [vmem:[%s6197_s4 + $0xd8] sm:$0xf0]  ;;  %v3916_v12 = vld [vmem:[%s6197_s4 + $0x6c] sm:$0xf] }
 0x1ac   :  { %v2799_v13 = vld [vmem:[%s6197_s4 + $0x78] sm:$0xf0]  ;;  %v3948_v16 = vld [vmem:[%s6197_s4 + $0x16c] sm:$0xf] }
 0x1ad   :  { %v132_v33 = vmax.f32 %v129_v31, 0.0  ;;  %v3917_v31 = vld [vmem:[%s6197_s4 + $0x6c] sm:$0xf0]  ;;  %652 = vmatpush.bf16.msrb.mxu3 %v2934_v28  ;;  %v3932_v28 = vld [vmem:[%s6197_s4 + $0xec] sm:$0xf]  ;;  %v2802_v15 = vor.u32 %v3916_v12, %v2799_v13 }
 0x1ae   :  { %v2790_v39 = vor.u32 %v3917_v31, %v2789_v30  ;;  %v2866_v31 = vor.u32 %v3932_v28, %v2863_v29  ;;  %v2911_v29 = vld [vmem:[%s6197_s4 + $0x158] sm:$0xf0]  ;;  %v3643_v12 = vld [vmem:[%s6198_s5 + $0x508] sm:$0xf]  ;;  %v4131_v13 = vld [vmem:[%s6198_s5 + $0x520] sm:$0xf0] }
 0x1af   :  { %v133_v34 = vpack.c.bf16 %v132_v33, %v131_v32  ;;  %v2917_v32 = vld [vmem:[%s6197_s4 + $0x160] sm:$0xf]  ;;  %v2938_v33 = vor.u32 %v3951_v25, %v2935_v26  ;;  %668 = vmatpush.bf16.msra.mxu0 %v2778_v55  ;;  %v2989_v25 = vld [vmem:[%s6197_s4 + $0x1e8] sm:$0xf]  ;;  %v2862_v26 = vor.u32 %v3934_v24, %v2861_v23 }
 0x1b0   :  { %639 = vmatpush.bf16.msrb.mxu2 %v2790_v39  ;;  %v2990_v30 = vor.u32 %v3966_v27, %v2989_v25  ;;  %v3962_v39 = vld [vmem:[%s6197_s4 + $0x1d4] sm:$0xf0]  ;;  %v3912_v25 = vld [vmem:[%s6197_s4 + $0x4c] sm:$0xf] }
 0x1b1   :  { %2718 = vmatmul.msk.bf16.vlgmr.msra.gmra.mxu3 %vm75_vm2, %v133_v34  ;;  %v3949_v34 = vld [vmem:[%s6197_s4 + $0x16c] sm:$0xf0]  ;;  %680 = vmatpush.bf16.msra.mxu1 %v2938_v33  ;;  %v2991_v33 = vld [vmem:[%s6197_s4 + $0x1f8] sm:$0xf0]  ;;  %v2974_v42 = vor.u32 %v3962_v39, %v2973_v37  ;;  %v3944_v27 = vld [vmem:[%s6197_s4 + $0x14c] sm:$0xf] }
 0x1b2   :  { %v2918_v40 = vor.u32 %v3949_v34, %v2917_v32  ;;  %v3964_v32 = vld [vmem:[%s6197_s4 + $0x1ec] sm:$0xf]  ;;  %v2767_v37 = vld [vmem:[%s6197_s4 + $0x38] sm:$0xf0] }
 0x1b3   :  { %669 = vmatpush.bf16.msra.mxu0 %v2762_v4  ;;  %v2994_v34 = vor.u32 %v3964_v32, %v2991_v33  ;;  %v3952_v4 = vld [vmem:[%s6197_s4 + $0x18c] sm:$0xf]  ;;  %v2914_v32 = vor.u32 %v3944_v27, %v2911_v29  ;;  %v2893_v33 = vld [vmem:[%s6197_s4 + $0x128] sm:$0xf]  ;;  %v2895_v39 = vld [vmem:[%s6197_s4 + $0x138] sm:$0xf0] }
 0x1b4   :  { %653 = vmatpush.bf16.msrb.mxu3 %v2918_v40  ;;  %640 = vmatpush.bf16.msrb.mxu2 %v2774_v53  ;;  %v3928_v40 = vld [vmem:[%s6197_s4 + $0xcc] sm:$0xf]  ;;  %v2831_v53 = vld [vmem:[%s6197_s4 + $0xb8] sm:$0xf0]  ;;  %v2946_v6 = vor.u32 %v3952_v4, %v2943_v5  ;;  %v3195_v4 = vld [vmem:[%s6198_s5 + $0x188] sm:$0xf] }
 0x1b5   :  { %681 = vmatpush.bf16.msra.mxu1 %v2922_v46  ;;  %v2850_v43 = vor.u32 %v3928_v40, %v2847_v41  ;;  %v2770_v41 = vor.u32 %v3908_v35, %v2767_v37  ;;  %v4019_v5 = vld [vmem:[%s6198_s5 + $0x1a0] sm:$0xf0]  ;;  %v4124_v27 = vld [vmem:[%s6198_s5 + $0x4e8] sm:$0xf0]  ;;  %v3363_v29 = vld [vmem:[%s6198_s5 + $0x2d8] sm:$0xf] }
 0x1b6   :  { %v3811_v35 = vld [vmem:[%s6198_s5 + $0x658] sm:$0xf]  ;;  %v4173_v37 = vld [vmem:[%s6198_s5 + $0x670] sm:$0xf0] }
 0x1b7   :  { %670 = vmatpush.bf16.msra.mxu0 %v2746_v20  ;;  %v3914_v20 = vld [vmem:[%s6197_s4 + $0x54] sm:$0xf0] }
 0x1b8   :  { %654 = vmatpush.bf16.msrb.mxu3 %v2902_v54  ;;  %641 = vmatpush.bf16.msrb.mxu2 %v2758_v1  ;;  %v2958_v54 = vor.u32 %v3958_v51, %v2957_v49  ;;  %v2815_v1 = vld [vmem:[%s6197_s4 + $0x98] sm:$0xf0]  ;;  %v3936_v49 = vld [vmem:[%s6197_s4 + $0x10c] sm:$0xf] }
 0x1b9   :  { %682 = vmatpush.bf16.msra.mxu1 %v2906_v59  ;;  %v2813_v59 = vld [vmem:[%s6197_s4 + $0x88] sm:$0xf] }
 0x1ba   :  { %v2814_v62 = vor.u32 %v3922_v60, %v2813_v59 }
 0x1bc   :  { %655 = vmatpush.bf16.msrb.mxu3 %v2886_v3  ;;  %642 = vmatpush.bf16.msrb.mxu2 %v2742_v14  ;;  %v2818_v3 = vor.u32 %v3920_v0, %v2815_v1  ;;  %v2926_v14 = vor.u32 %v3950_v11, %v2925_v9  ;;  %v3419_v0 = vld [vmem:[%s6198_s5 + $0x348] sm:$0xf]  ;;  %v4187_v9 = vld [vmem:[%s6198_s5 + $0x6e0] sm:$0xf0] }
 0x1bd   :  { %683 = vmatpush.bf16.msra.mxu1 %v2890_v8  ;;  %v3918_v8 = vld [vmem:[%s6197_s4 + $0x74] sm:$0xf0] }
 0x1c0   :  { %656 = vmatpush.bf16.msrb.mxu3 %v2870_v19  ;;  %691 = vmatpush.bf16.msra.mxu2 %v2862_v26  ;;  %v2783_v26 = vld [vmem:[%s6197_s4 + $0x58] sm:$0xf0] }
 0x1c1   :  { %684 = vmatpush.bf16.msra.mxu1 %v2874_v22  ;;  %v3946_v22 = vld [vmem:[%s6197_s4 + $0x154] sm:$0xf0]  ;;  %v2786_v28 = vor.u32 %v3912_v25, %v2783_v26  ;;  %v4180_v25 = vld [vmem:[%s6198_s5 + $0x6a8] sm:$0xf0]  ;;  %v3615_v26 = vld [vmem:[%s6198_s5 + $0x4d0] sm:$0xf] }
 0x1c4   :  { %705 = vmatpush.bf16.msra.mxu3 %v2990_v30  ;;  %692 = vmatpush.bf16.msra.mxu2 %v2846_v38  ;;  %v2765_v30 = vld [vmem:[%s6197_s4 + $0x28] sm:$0xf]  ;;  %v3940_v38 = vld [vmem:[%s6197_s4 + $0x12c] sm:$0xf] }
 0x1c8   :  { %706 = vmatpush.bf16.msra.mxu3 %v2974_v42  ;;  %693 = vmatpush.bf16.msra.mxu2 %v2830_v50  ;;  %v2749_v42 = vld [vmem:[%s6197_s4 + $0x8] sm:$0xf]  ;;  %v2879_v50 = vld [vmem:[%s6197_s4 + $0x118] sm:$0xf0] }
 0x1cc   :  { %707 = vmatpush.bf16.msra.mxu3 %v2958_v54  ;;  %694 = vmatpush.bf16.msra.mxu2 %v2814_v62  ;;  %v2882_v54 = vor.u32 %v3936_v49, %v2879_v50  ;;  %v4166_v49 = vld [vmem:[%s6198_s5 + $0x638] sm:$0xf0]  ;;  %v3559_v50 = vld [vmem:[%s6198_s5 + $0x460] sm:$0xf] }
 0x234   :  { %v164_v45 = vpop.f32.mrf.mxu3 }
 0x235   :  { %v165_v2 = vadd.f32 %v164_v45, %v139_v52  ;;  %v2975_v45 = vld [vmem:[%s6197_s4 + $0x1d8] sm:$0xf0] }
 0x236   :  { %v2978_v46 = vor.u32 %v3960_v44, %v2975_v45  ;;  %v2877_v44 = vld [vmem:[%s6197_s4 + $0x108] sm:$0xf]  ;;  %v2898_v45 = vor.u32 %v3940_v38, %v2895_v39  ;;  %v3587_v38 = vld [vmem:[%s6198_s5 + $0x498] sm:$0xf]  ;;  %v4117_v39 = vld [vmem:[%s6198_s5 + $0x4b0] sm:$0xf0] }
 0x237   :  { %v169_v17 = vmax.f32 %v165_v2, 0.0  ;;  %v2942_v2 = vor.u32 %v3954_v63, %v2941_v61 }
 0x239   :  { %708 = vmatpush.bf16.msra.mxu3 %v2942_v2 }
 0x23c   :  { %v166_v7 = vpop.f32.mrf.mxu3 }
 0x23d   :  { %v167_v10 = vadd.f32 %v166_v7, %v139_v52  ;;  %v3924_v52 = vld [vmem:[%s6197_s4 + $0xac] sm:$0xf]  ;;  %v2797_v7 = vld [vmem:[%s6197_s4 + $0x68] sm:$0xf]  ;;  %709 = vmatpush.bf16.msra.mxu3 %v2926_v14 }
 0x23e   :  { %v2834_v55 = vor.u32 %v3924_v52, %v2831_v53  ;;  %v2754_v53 = vor.u32 %v3904_v47, %v2751_v48  ;;  %v3783_v47 = vld [vmem:[%s6198_s5 + $0x620] sm:$0xf]  ;;  %v3588_v48 = vor.u32 %v4117_v39, %v3587_v38 }
 0x23f   :  { %v170_v18 = vmax.f32 %v167_v10, 0.0  ;;  %v2798_v10 = vor.u32 %v3918_v8, %v2797_v7  ;;  %v3867_v8 = vld [vmem:[%s6198_s5 + $0x6c8] sm:$0xf] }
 0x241   :  { %v171_v21 = vpack.c.bf16 %v170_v18, %v169_v17  ;;  %v2927_v17 = vld [vmem:[%s6197_s4 + $0x178] sm:$0xf0]  ;;  %v2781_v18 = vld [vmem:[%s6197_s4 + $0x48] sm:$0xf]  ;;  %695 = vmatpush.bf16.msra.mxu2 %v2798_v10 }
 0x242   :  { %v2930_v19 = vor.u32 %v3948_v16, %v2927_v17  ;;  %v2782_v23 = vor.u32 %v3914_v20, %v2781_v18  ;;  %v3391_v17 = vld [vmem:[%s6198_s5 + $0x310] sm:$0xf]  ;;  %v4068_v18 = vld [vmem:[%s6198_s5 + $0x328] sm:$0xf0] }
 0x243   :  { %2736 = vmatmul.msk.bf16.vlgmr.msrb.gmra.mxu0 %vm75_vm2, %v171_v21  ;;  %2737 = vmatmul.msk.bf16.vlgmr.msrb.gmra.mxu1 %vm75_vm2, %v171_v21  ;;  %v2909_v21 = vld [vmem:[%s6197_s4 + $0x148] sm:$0xf]  ;;  %v3167_v20 = vld [vmem:[%s6198_s5 + $0x150] sm:$0xf] }
 0x244   :  { %719 = vmatpush.bf16.msrb.mxu0 %v2866_v31  ;;  %733 = vmatpush.bf16.msrb.mxu1 %v2994_v34  ;;  %v2910_v24 = vor.u32 %v3946_v22, %v2909_v21  ;;  %v3910_v31 = vld [vmem:[%s6197_s4 + $0x34] sm:$0xf0]  ;;  %v4012_v21 = vld [vmem:[%s6198_s5 + $0x168] sm:$0xf0]  ;;  %v3868_v22 = vor.u32 %v4187_v9, %v3867_v8  ;;  %v3727_v8 = vld [vmem:[%s6198_s5 + $0x5b0] sm:$0xf] }
 0x245   :  { %v3942_v34 = vld [vmem:[%s6197_s4 + $0x134] sm:$0xf0]  ;;  %696 = vmatpush.bf16.msra.mxu2 %v2782_v23  ;;  %v2766_v36 = vor.u32 %v3910_v31, %v2765_v30  ;;  %v3839_v23 = vld [vmem:[%s6198_s5 + $0x690] sm:$0xf]  ;;  %v4061_v30 = vld [vmem:[%s6198_s5 + $0x2f0] sm:$0xf0]  ;;  %v3168_v31 = vor.u32 %v4012_v21, %v3167_v20 }
 0x246   :  { %710 = vmatpush.bf16.msra.mxu3 %v2910_v24  ;;  %v2894_v40 = vor.u32 %v3942_v34, %v2893_v33  ;;  %v3644_v24 = vor.u32 %v4131_v13, %v3643_v12  ;;  %v4005_v33 = vld [vmem:[%s6198_s5 + $0x130] sm:$0xf0]  ;;  %v3840_v34 = vor.u32 %v4180_v25, %v3839_v23  ;;  %v4152_v9 = vld [vmem:[%s6198_s5 + $0x5c8] sm:$0xf0]  ;;  %v3223_v20 = vld [vmem:[%s6198_s5 + $0x1c0] sm:$0xf] }
 0x247   :  { %v4033_v13 = vld [vmem:[%s6198_s5 + $0x210] sm:$0xf0]  ;;  %v4026_v21 = vld [vmem:[%s6198_s5 + $0x1d8] sm:$0xf0]  ;;  %v4072_v23 = vld [vmem:[%s6198_s5 + $0x34c] sm:$0xf] }
 0x248   :  { %720 = vmatpush.bf16.msrb.mxu0 %v2850_v43  ;;  %734 = vmatpush.bf16.msrb.mxu1 %v2978_v46  ;;  %v3906_v43 = vld [vmem:[%s6197_s4 + $0x14] sm:$0xf0]  ;;  %v3970_v25 = vld [vmem:[%s6198_s5 + $0x18] sm:$0xf0] }
 0x249   :  { %v3938_v46 = vld [vmem:[%s6197_s4 + $0x114] sm:$0xf0]  ;;  %697 = vmatpush.bf16.msra.mxu2 %v2766_v36  ;;  %v2750_v51 = vor.u32 %v3906_v43, %v2749_v42  ;;  %v3616_v36 = vor.u32 %v4124_v27, %v3615_v26  ;;  %v4054_v42 = vld [vmem:[%s6198_s5 + $0x2b8] sm:$0xf0]  ;;  %v3421_v27 = vld [vmem:[%s6198_s5 + $0x364] sm:$0xf0] }
 0x24a   :  { %711 = vmatpush.bf16.msra.mxu3 %v2894_v40  ;;  %v2878_v52 = vor.u32 %v3938_v46, %v2877_v44  ;;  %v3364_v40 = vor.u32 %v4061_v30, %v3363_v29  ;;  %v3111_v44 = vld [vmem:[%s6198_s5 + $0xe0] sm:$0xf]  ;;  %v3812_v46 = vor.u32 %v4173_v37, %v3811_v35  ;;  %v3197_v29 = vld [vmem:[%s6198_s5 + $0x1a4] sm:$0xf0]  ;;  %v3224_v30 = vor.u32 %v4026_v21, %v3223_v20  ;;  %v3393_v35 = vld [vmem:[%s6198_s5 + $0x32c] sm:$0xf0] }
 0x24b   :  { %v3169_v37 = vld [vmem:[%s6198_s5 + $0x16c] sm:$0xf0]  ;;  %v4170_v20 = vld [vmem:[%s6198_s5 + $0x65c] sm:$0xf] }
 0x24c   :  { %721 = vmatpush.bf16.msrb.mxu0 %v2834_v55  ;;  %735 = vmatpush.bf16.msrb.mxu1 %v2962_v58  ;;  %v2719_v55 = vld [vmem:[%s6199_s6 + $0x4] ss:$8 sm:$0x3] }
 0x24d   :  { %698 = vmatpush.bf16.msra.mxu2 %v2750_v51  ;;  %v179_v58 = vperm.slane %v2719_v55, 0  ;;  %v180_v59 = vperm.slane %v2719_v55, 1  ;;  %v4110_v51 = vld [vmem:[%s6198_s5 + $0x478] sm:$0xf0] }
 0x24e   :  { %712 = vmatpush.bf16.msra.mxu3 %v2878_v52 }
 0x250   :  { %722 = vmatpush.bf16.msrb.mxu0 %v2818_v3  ;;  %736 = vmatpush.bf16.msrb.mxu1 %v2946_v6  ;;  %v4075_v3 = vld [vmem:[%s6198_s5 + $0x360] sm:$0xf0] }
 0x251   :  { %v3420_v16 = vor.u32 %v4075_v3, %v3419_v0  ;;  %v4040_v3 = vld [vmem:[%s6198_s5 + $0x248] sm:$0xf0] }
 0x254   :  { %723 = vmatpush.bf16.msrb.mxu0 %v2802_v15  ;;  %737 = vmatpush.bf16.msrb.mxu1 %v2930_v19  ;;  %v3196_v19 = vor.u32 %v4019_v5, %v3195_v4  ;;  %v3055_v4 = vld [vmem:[%s6198_s5 + $0x70] sm:$0xf]  ;;  %v3984_v5 = vld [vmem:[%s6198_s5 + $0x88] sm:$0xf0] }
 0x255   :  { %v3056_v12 = vor.u32 %v3984_v5, %v3055_v4  ;;  %v3281_v4 = vld [vmem:[%s6198_s5 + $0x24c] sm:$0xf0] }
 0x258   :  { %724 = vmatpush.bf16.msrb.mxu0 %v2786_v28  ;;  %738 = vmatpush.bf16.msrb.mxu1 %v2914_v32  ;;  %v3392_v28 = vor.u32 %v4068_v18, %v3391_v17  ;;  %v3139_v32 = vld [vmem:[%s6198_s5 + $0x118] sm:$0xf]  ;;  %v4145_v18 = vld [vmem:[%s6198_s5 + $0x590] sm:$0xf0] }
 0x259   :  { %v3140_v43 = vor.u32 %v4005_v33, %v3139_v32  ;;  %v3699_v17 = vld [vmem:[%s6198_s5 + $0x578] sm:$0xf]  ;;  %v3424_v32 = vor.u32 %v4072_v23, %v3421_v27  ;;  %v4065_v33 = vld [vmem:[%s6198_s5 + $0x314] sm:$0xf] }
 0x25a   :  { %v3700_v26 = vor.u32 %v4145_v18, %v3699_v17  ;;  %v3396_v38 = vor.u32 %v4065_v33, %v3393_v35  ;;  %v4030_v18 = vld [vmem:[%s6198_s5 + $0x1fc] sm:$0xf] }
 0x25c   :  { %725 = vmatpush.bf16.msrb.mxu0 %v2770_v41  ;;  %739 = vmatpush.bf16.msrb.mxu1 %v2898_v45  ;;  %v3335_v41 = vld [vmem:[%s6198_s5 + $0x2a0] sm:$0xf]  ;;  %v3998_v45 = vld [vmem:[%s6198_s5 + $0xf8] sm:$0xf0] }
 0x25d   :  { %v3336_v52 = vor.u32 %v4054_v42, %v3335_v41  ;;  %v3112_v55 = vor.u32 %v3998_v45, %v3111_v44  ;;  %v3365_v41 = vld [vmem:[%s6198_s5 + $0x2f4] sm:$0xf0]  ;;  %v3337_v44 = vld [vmem:[%s6198_s5 + $0x2bc] sm:$0xf0] }
 0x260   :  { %726 = vmatpush.bf16.msrb.mxu0 %v2754_v53  ;;  %740 = vmatpush.bf16.msrb.mxu1 %v2882_v54  ;;  %v3307_v53 = vld [vmem:[%s6198_s5 + $0x268] sm:$0xf]  ;;  %v4047_v54 = vld [vmem:[%s6198_s5 + $0x280] sm:$0xf0] }
 0x261   :  { %v3308_v0 = vor.u32 %v4047_v54, %v3307_v53  ;;  %v4138_v53 = vld [vmem:[%s6198_s5 + $0x558] sm:$0xf0] }
 0x2c0   :  { %v215_v56 = vpop.f32.mrf.mxu0  ;;  %v229_v57 = vpop.f32.mrf.mxu1 }
 0x2c1   :  { %v216_v60 = vadd.f32 %v215_v56, %v179_v58  ;;  %v230_v61 = vadd.f32 %v229_v57, %v180_v59  ;;  %v3083_v56 = vld [vmem:[%s6198_s5 + $0xa8] sm:$0xf]  ;;  %v3991_v57 = vld [vmem:[%s6198_s5 + $0xc0] sm:$0xf0] }
 0x2c3   :  { %v234_v6 = vmax.f32 %v216_v60, 0.0  ;;  %v235_v7 = vmax.f32 %v230_v61, 0.0  ;;  %v3560_v60 = vor.u32 %v4110_v51, %v3559_v50  ;;  %v4159_v61 = vld [vmem:[%s6198_s5 + $0x600] sm:$0xf0]  ;;  %v3141_v50 = vld [vmem:[%s6198_s5 + $0x134] sm:$0xf0] }
 0x2c8   :  { %v217_v62 = vpop.f32.mrf.mxu0  ;;  %v231_v63 = vpop.f32.mrf.mxu1 }
 0x2c9   :  { %v218_v1 = vadd.f32 %v217_v62, %v179_v58  ;;  %v232_v2 = vadd.f32 %v231_v63, %v180_v59  ;;  %v3784_v58 = vor.u32 %v4166_v49, %v3783_v47  ;;  %v3755_v59 = vld [vmem:[%s6198_s5 + $0x5e8] sm:$0xf]  ;;  %v4103_v63 = vld [vmem:[%s6198_s5 + $0x440] sm:$0xf0]  ;;  %v4096_v47 = vld [vmem:[%s6198_s5 + $0x408] sm:$0xf0] }
 0x2ca   :  { %v3531_v62 = vld [vmem:[%s6198_s5 + $0x428] sm:$0xf]  ;;  %v4002_v49 = vld [vmem:[%s6198_s5 + $0x11c] sm:$0xf] }
 0x2cb   :  { %v236_v10 = vmax.f32 %v218_v1, 0.0  ;;  %v237_v11 = vmax.f32 %v232_v2, 0.0  ;;  %v3279_v1 = vld [vmem:[%s6198_s5 + $0x230] sm:$0xf]  ;;  %v3084_v2 = vor.u32 %v3991_v57, %v3083_v56  ;;  %v3144_v51 = vor.u32 %v4002_v49, %v3141_v50  ;;  %v3309_v56 = vld [vmem:[%s6198_s5 + $0x284] sm:$0xf0] }
 0x2cc   :  { %v4184_v57 = vld [vmem:[%s6198_s5 + $0x6cc] sm:$0xf]  ;;  %v3561_v49 = vld [vmem:[%s6198_s5 + $0x47c] sm:$0xf0] }
 0x2cd   :  { %v4798_v14 = vpack.c.bf16 %v236_v10, %v234_v6  ;;  %v4800_v15 = vpack.c.bf16 %v237_v11, %v235_v7  ;;  %v3756_v6 = vor.u32 %v4159_v61, %v3755_v59  ;;  %v3532_v7 = vor.u32 %v4103_v63, %v3531_v62  ;;  %v3251_v11 = vld [vmem:[%s6198_s5 + $0x1f8] sm:$0xf]  ;;  %v3869_v59 = vld [vmem:[%s6198_s5 + $0x6e4] sm:$0xf0]  ;;  %v4089_v61 = vld [vmem:[%s6198_s5 + $0x3d0] sm:$0xf0] }
 0x2ce   :  { %v3280_v10 = vor.u32 %v4040_v3, %v3279_v1  ;;  %v3872_v62 = vor.u32 %v4184_v57, %v3869_v59  ;;  %v3113_v1 = vld [vmem:[%s6198_s5 + $0xfc] sm:$0xf0]  ;;  %v4037_v3 = vld [vmem:[%s6198_s5 + $0x234] sm:$0xf]  ;;  %v4142_v57 = vld [vmem:[%s6198_s5 + $0x57c] sm:$0xf] }
 0x2cf   :  { %643 = vmatmul.bf16.vlgmr.msrb.gmra.mxu2 %v4798_v14  ;;  %657 = vmatmul.bf16.vlgmr.msrb.gmra.mxu3 %v4800_v15  ;;  %v3284_v5 = vor.u32 %v4037_v3, %v3281_v4 }
 0x2d0   :  { %671 = vmatmul.bf16.vlgmr.msra.gmra.mxu0 %v4798_v14  ;;  %685 = vmatmul.bf16.vlgmr.msra.gmra.mxu1 %v4800_v15 }
 0x2d1   :  { %2200 = vmatpush.bf16.msrb.mxu3 %v3420_v16  ;;  %2186 = vmatpush.bf16.msrb.mxu2 %v3196_v19  ;;  %v3027_v16 = vld [vmem:[%s6198_s5 + $0x38] sm:$0xf]  ;;  %v3252_v19 = vor.u32 %v4033_v13, %v3251_v11  ;;  %v3988_v11 = vld [vmem:[%s6198_s5 + $0xac] sm:$0xf] }
 0x2d2   :  { %2228 = vmatpush.bf16.msra.mxu1 %v3868_v22  ;;  %2214 = vmatpush.bf16.msra.mxu0 %v3644_v24  ;;  %v2999_v24 = vld [vmem:[%s6198_s5] sm:$0xf] }
 0x2d5   :  { %2201 = vmatpush.bf16.msrb.mxu3 %v3392_v28  ;;  %2187 = vmatpush.bf16.msrb.mxu2 %v3168_v31  ;;  %v4016_v28 = vld [vmem:[%s6198_s5 + $0x18c] sm:$0xf]  ;;  %v3000_v31 = vor.u32 %v3970_v25, %v2999_v24  ;;  %v3981_v24 = vld [vmem:[%s6198_s5 + $0x74] sm:$0xf]  ;;  %v3057_v25 = vld [vmem:[%s6198_s5 + $0x8c] sm:$0xf0] }
 0x2d6   :  { %2229 = vmatpush.bf16.msra.mxu1 %v3840_v34  ;;  %2215 = vmatpush.bf16.msra.mxu0 %v3616_v36  ;;  %v3200_v34 = vor.u32 %v4016_v28, %v3197_v29  ;;  %v4009_v36 = vld [vmem:[%s6198_s5 + $0x154] sm:$0xf]  ;;  %v3060_v27 = vor.u32 %v3981_v24, %v3057_v25  ;;  %v3617_v28 = vld [vmem:[%s6198_s5 + $0x4ec] sm:$0xf0] }
 0x2d7   :  { %v3172_v39 = vor.u32 %v4009_v36, %v3169_v37  ;;  %v3974_v36 = vld [vmem:[%s6198_s5 + $0x3c] sm:$0xf]  ;;  %v3029_v37 = vld [vmem:[%s6198_s5 + $0x54] sm:$0xf0] }
 0x2d9   :  { %2202 = vmatpush.bf16.msrb.mxu3 %v3364_v40  ;;  %2188 = vmatpush.bf16.msrb.mxu2 %v3140_v43  ;;  %v4058_v40 = vld [vmem:[%s6198_s5 + $0x2dc] sm:$0xf]  ;;  %v4051_v43 = vld [vmem:[%s6198_s5 + $0x2a4] sm:$0xf] }
 0x2da   :  { %2230 = vmatpush.bf16.msra.mxu1 %v3812_v46  ;;  %2216 = vmatpush.bf16.msra.mxu0 %v3588_v48  ;;  %v3368_v42 = vor.u32 %v4058_v40, %v3365_v41  ;;  %v3340_v45 = vor.u32 %v4051_v43, %v3337_v44  ;;  %v3503_v46 = vld [vmem:[%s6198_s5 + $0x3f0] sm:$0xf]  ;;  %v3589_v40 = vld [vmem:[%s6198_s5 + $0x4b4] sm:$0xf0]  ;;  %v3757_v43 = vld [vmem:[%s6198_s5 + $0x604] sm:$0xf0] }
 0x2db   :  { %v3504_v48 = vor.u32 %v4096_v47, %v3503_v46  ;;  %v3001_v46 = vld [vmem:[%s6198_s5 + $0x1c] sm:$0xf0]  ;;  %v4107_v47 = vld [vmem:[%s6198_s5 + $0x464] sm:$0xf] }
 0x2dc   :  { %v3564_v50 = vor.u32 %v4107_v47, %v3561_v49  ;;  %v3175_v47 = vld [vmem:[%s6198_s5 + $0x158] sm:$0xf] }
 0x2dd   :  { %2203 = vmatpush.bf16.msrb.mxu3 %v3336_v52  ;;  %2189 = vmatpush.bf16.msrb.mxu2 %v3112_v55  ;;  %v3671_v52 = vld [vmem:[%s6198_s5 + $0x540] sm:$0xf]  ;;  %v4044_v55 = vld [vmem:[%s6198_s5 + $0x26c] sm:$0xf] }
 0x2de   :  { %2231 = vmatpush.bf16.msra.mxu1 %v3784_v58  ;;  %2217 = vmatpush.bf16.msra.mxu0 %v3560_v60  ;;  %v3672_v54 = vor.u32 %v4138_v53, %v3671_v52  ;;  %v3312_v58 = vor.u32 %v4044_v55, %v3309_v56  ;;  %v3475_v60 = vld [vmem:[%s6198_s5 + $0x3b8] sm:$0xf]  ;;  %v3729_v52 = vld [vmem:[%s6198_s5 + $0x5cc] sm:$0xf0]  ;;  %v3533_v55 = vld [vmem:[%s6198_s5 + $0x444] sm:$0xf0] }
 0x2df   :  { %699 = vmatmul.bf16.vlgmr.msra.gmra.mxu2 %v4798_v14  ;;  %713 = vmatmul.bf16.vlgmr.msra.gmra.mxu3 %v4800_v15  ;;  %v3476_v63 = vor.u32 %v4089_v61, %v3475_v60  ;;  %v4093_v60 = vld [vmem:[%s6198_s5 + $0x3f4] sm:$0xf]  ;;  %v3505_v61 = vld [vmem:[%s6198_s5 + $0x40c] sm:$0xf0] }
 0x2e0   :  { %727 = vmatmul.bf16.vlgmr.msrb.gmra.mxu0 %v4798_v14  ;;  %741 = vmatmul.bf16.vlgmr.msrb.gmra.mxu1 %v4800_v15  ;;  %v3977_v14 = vld [vmem:[%s6198_s5 + $0x50] sm:$0xf0]  ;;  %v3728_v15 = vor.u32 %v4152_v9, %v3727_v8  ;;  %v3447_v8 = vld [vmem:[%s6198_s5 + $0x380] sm:$0xf] }
 0x2e1   :  { %2204 = vmatpush.bf16.msrb.mxu3 %v3308_v0  ;;  %2190 = vmatpush.bf16.msrb.mxu2 %v3084_v2  ;;  %v3028_v22 = vor.u32 %v3977_v14, %v3027_v16  ;;  %v3995_v0 = vld [vmem:[%s6198_s5 + $0xe4] sm:$0xf]  ;;  %v4128_v14 = vld [vmem:[%s6198_s5 + $0x50c] sm:$0xf] }
 0x2e2   :  { %2232 = vmatpush.bf16.msra.mxu1 %v3756_v6  ;;  %2218 = vmatpush.bf16.msra.mxu0 %v3532_v7  ;;  %v3116_v2 = vor.u32 %v3995_v0, %v3113_v1  ;;  %v4177_v6 = vld [vmem:[%s6198_s5 + $0x694] sm:$0xf]  ;;  %v3841_v7 = vld [vmem:[%s6198_s5 + $0x6ac] sm:$0xf0]  ;;  %v4135_v0 = vld [vmem:[%s6198_s5 + $0x544] sm:$0xf] }
 0x2e3   :  { %v3844_v9 = vor.u32 %v4177_v6, %v3841_v7  ;;  %v3673_v1 = vld [vmem:[%s6198_s5 + $0x55c] sm:$0xf0]  ;;  %v3477_v6 = vld [vmem:[%s6198_s5 + $0x3d4] sm:$0xf0] }
 0x2e5   :  { %2205 = vmatpush.bf16.msrb.mxu3 %v3280_v10  ;;  %2191 = vmatpush.bf16.msrb.mxu2 %v3056_v12  ;;  %v4082_v10 = vld [vmem:[%s6198_s5 + $0x398] sm:$0xf0]  ;;  %v3085_v12 = vld [vmem:[%s6198_s5 + $0xc4] sm:$0xf0] }
 0x2e6   :  { %2233 = vmatpush.bf16.msra.mxu1 %v3728_v15  ;;  %2219 = vmatpush.bf16.msra.mxu0 %v3504_v48  ;;  %v3448_v13 = vor.u32 %v4082_v10, %v3447_v8  ;;  %v3088_v16 = vor.u32 %v3988_v11, %v3085_v12  ;;  %v3645_v15 = vld [vmem:[%s6198_s5 + $0x524] sm:$0xf0]  ;;  %v3449_v10 = vld [vmem:[%s6198_s5 + $0x39c] sm:$0xf0] }
 0x2e7   :  { %v3648_v17 = vor.u32 %v4128_v14, %v3645_v15 }
 0x2e9   :  { %2206 = vmatpush.bf16.msrb.mxu3 %v3252_v19  ;;  %2192 = vmatpush.bf16.msrb.mxu2 %v3028_v22  ;;  %v3253_v19 = vld [vmem:[%s6198_s5 + $0x214] sm:$0xf0] }
 0x2ea   :  { %2234 = vmatpush.bf16.msra.mxu1 %v3700_v26  ;;  %2220 = vmatpush.bf16.msra.mxu0 %v3476_v63  ;;  %v3256_v21 = vor.u32 %v4030_v18, %v3253_v19  ;;  %v3813_v22 = vld [vmem:[%s6198_s5 + $0x674] sm:$0xf0]  ;;  %v4121_v26 = vld [vmem:[%s6198_s5 + $0x4d4] sm:$0xf]  ;;  %v3508_v63 = vor.u32 %v4093_v60, %v3505_v61 }
 0x2eb   :  { %v3816_v23 = vor.u32 %v4170_v20, %v3813_v22  ;;  %v3620_v29 = vor.u32 %v4121_v26, %v3617_v28  ;;  %v3427_v22 = vld [vmem:[%s6198_s5 + $0x350] sm:$0xf] }
 0x2ed   :  { %2207 = vmatpush.bf16.msrb.mxu3 %v3224_v30  ;;  %2193 = vmatpush.bf16.msrb.mxu2 %v3000_v31  ;;  %v4023_v30 = vld [vmem:[%s6198_s5 + $0x1c4] sm:$0xf]  ;;  %v3225_v31 = vld [vmem:[%s6198_s5 + $0x1dc] sm:$0xf0] }
 0x2ee   :  { %2235 = vmatpush.bf16.msra.mxu1 %v3672_v54  ;;  %2221 = vmatpush.bf16.msra.mxu0 %v3448_v13  ;;  %v3228_v33 = vor.u32 %v4023_v30, %v3225_v31  ;;  %v4100_v54 = vld [vmem:[%s6198_s5 + $0x42c] sm:$0xf] }
 0x2ef   :  { %v3536_v56 = vor.u32 %v4100_v54, %v3533_v55  ;;  %v3343_v55 = vld [vmem:[%s6198_s5 + $0x2a8] sm:$0xf] }
 0x2f1   :  { %2256 = vmatpush.bf16.msra.mxu3 %v3424_v32  ;;  %2242 = vmatpush.bf16.msra.mxu2 %v3200_v34  ;;  %v4163_v32 = vld [vmem:[%s6198_s5 + $0x624] sm:$0xf]  ;;  %v3785_v34 = vld [vmem:[%s6198_s5 + $0x63c] sm:$0xf0] }
 0x2f2   :  { %2284 = vmatpush.bf16.msrb.mxu1 %v3872_v62  ;;  %2270 = vmatpush.bf16.msrb.mxu0 %v3648_v17  ;;  %v3788_v35 = vor.u32 %v4163_v32, %v3785_v34  ;;  %v5155_v62 = vld [vmem:[%s6199_s6 + $0x5] ss:$8 sm:$0xf]  ;;  %v3399_v32 = vld [vmem:[%s6198_s5 + $0x318] sm:$0xf] }
 0x2f3   :  { %v308_v7 = vperm.slane %v5155_v62, 1  ;;  %v307_v14 = vperm.slane %v5155_v62, 0 }
 0x2f5   :  { %2257 = vmatpush.bf16.msra.mxu3 %v3396_v38  ;;  %2243 = vmatpush.bf16.msra.mxu2 %v3172_v39  ;;  %v4114_v38 = vld [vmem:[%s6198_s5 + $0x49c] sm:$0xf]  ;;  %v3032_v39 = vor.u32 %v3974_v36, %v3029_v37  ;;  %v3203_v37 = vld [vmem:[%s6198_s5 + $0x190] sm:$0xf] }
 0x2f6   :  { %2285 = vmatpush.bf16.msrb.mxu1 %v3844_v9  ;;  %2271 = vmatpush.bf16.msrb.mxu0 %v3620_v29  ;;  %v3592_v41 = vor.u32 %v4114_v38, %v3589_v40  ;;  %v4079_v9 = vld [vmem:[%s6198_s5 + $0x384] sm:$0xf]  ;;  %v4020_v38 = vld [vmem:[%s6198_s5 + $0x1a8] sm:$0xf0] }
 0x2f9   :  { %2258 = vmatpush.bf16.msra.mxu3 %v3368_v42  ;;  %2244 = vmatpush.bf16.msra.mxu2 %v3144_v51  ;;  %v4156_v42 = vld [vmem:[%s6198_s5 + $0x5ec] sm:$0xf]  ;;  %v4149_v51 = vld [vmem:[%s6198_s5 + $0x5b4] sm:$0xf] }
 0x2fa   :  { %2286 = vmatpush.bf16.msrb.mxu1 %v3816_v23  ;;  %v3760_v44 = vor.u32 %v4156_v42, %v3757_v43  ;;  %2272 = vmatpush.bf16.msrb.mxu0 %v3592_v41  ;;  %v3732_v53 = vor.u32 %v4149_v51, %v3729_v52  ;;  %v4076_v23 = vld [vmem:[%s6198_s5 + $0x368] sm:$0xf0]  ;;  %v3204_v43 = vor.u32 %v4020_v38, %v3203_v37  ;;  %v309_v52 = vperm.slane %v5155_v62, 2 }
 0x2fb   :  { %v3428_v30 = vor.u32 %v4076_v23, %v3427_v22  ;;  %v4181_v22 = vld [vmem:[%s6198_s5 + $0x6b0] sm:$0xf0] }
 0x2fd   :  { %2259 = vmatpush.bf16.msra.mxu3 %v3340_v45  ;;  %2245 = vmatpush.bf16.msra.mxu2 %v3116_v2  ;;  %v3967_v45 = vld [vmem:[%s6198_s5 + $0x4] sm:$0xf]  ;;  %v3676_v2 = vor.u32 %v4135_v0, %v3673_v1  ;;  %v3315_v1 = vld [vmem:[%s6198_s5 + $0x270] sm:$0xf] }
 0x2fe   :  { %2287 = vmatpush.bf16.msrb.mxu1 %v3788_v35  ;;  %v3004_v48 = vor.u32 %v3967_v45, %v3001_v46  ;;  %2273 = vmatpush.bf16.msrb.mxu0 %v3564_v50  ;;  %v4062_v45 = vld [vmem:[%s6198_s5 + $0x2f8] sm:$0xf0] }
 0x301   :  { %2260 = vmatpush.bf16.msra.mxu3 %v3312_v58  ;;  %2246 = vmatpush.bf16.msra.mxu2 %v3088_v16  ;;  %v3701_v58 = vld [vmem:[%s6198_s5 + $0x594] sm:$0xf0]  ;;  %v3452_v16 = vor.u32 %v4079_v9, %v3449_v10 }
 0x302   :  { %2288 = vmatpush.bf16.msrb.mxu1 %v3760_v44  ;;  %v3704_v59 = vor.u32 %v4142_v57, %v3701_v58  ;;  %2274 = vmatpush.bf16.msrb.mxu0 %v3536_v56  ;;  %v3371_v44 = vld [vmem:[%s6198_s5 + $0x2e0] sm:$0xf]  ;;  %v4055_v56 = vld [vmem:[%s6198_s5 + $0x2c0] sm:$0xf0] }
 0x303   :  { %v3147_v58 = vld [vmem:[%s6198_s5 + $0x120] sm:$0xf]  ;;  %v3344_v0 = vor.u32 %v4055_v56, %v3343_v55  ;;  %v3978_v56 = vld [vmem:[%s6198_s5 + $0x58] sm:$0xf0] }
 0x304   :  { %v3035_v55 = vld [vmem:[%s6198_s5 + $0x40] sm:$0xf] }
 0x305   :  { %2261 = vmatpush.bf16.msra.mxu3 %v3284_v5  ;;  %2247 = vmatpush.bf16.msra.mxu2 %v3060_v27  ;;  %v4086_v5 = vld [vmem:[%s6198_s5 + $0x3bc] sm:$0xf] }
 0x306   :  { %2289 = vmatpush.bf16.msrb.mxu1 %v3732_v53  ;;  %2275 = vmatpush.bf16.msrb.mxu0 %v3508_v63  ;;  %v3480_v8 = vor.u32 %v4086_v5, %v3477_v6  ;;  %v3372_v53 = vor.u32 %v4062_v45, %v3371_v44  ;;  %v3875_v5 = vld [vmem:[%s6198_s5 + $0x6d0] sm:$0xf]  ;;  %v4188_v6 = vld [vmem:[%s6198_s5 + $0x6e8] sm:$0xf0] }
 0x309   :  { %2262 = vmatpush.bf16.msra.mxu3 %v3256_v21  ;;  %2248 = vmatpush.bf16.msra.mxu2 %v3032_v39  ;;  %v310_v39 = vperm.slane %v5155_v62, 3 }
 0x30a   :  { %2290 = vmatpush.bf16.msrb.mxu1 %v3704_v59  ;;  %2276 = vmatpush.bf16.msrb.mxu0 %v3480_v8  ;;  %v4006_v59 = vld [vmem:[%s6198_s5 + $0x138] sm:$0xf0]  ;;  %v3999_v8 = vld [vmem:[%s6198_s5 + $0x100] sm:$0xf0] }
 0x30d   :  { %2263 = vmatpush.bf16.msra.mxu3 %v3228_v33  ;;  %2249 = vmatpush.bf16.msra.mxu2 %v3004_v48  ;;  %v4069_v33 = vld [vmem:[%s6198_s5 + $0x330] sm:$0xf0] }
 0x30e   :  { %2291 = vmatpush.bf16.msrb.mxu1 %v3676_v2  ;;  %2277 = vmatpush.bf16.msrb.mxu0 %v3452_v16  ;;  %v3400_v42 = vor.u32 %v4069_v33, %v3399_v32  ;;  %v4013_v48 = vld [vmem:[%s6198_s5 + $0x170] sm:$0xf0]  ;;  %v3259_v33 = vld [vmem:[%s6198_s5 + $0x200] sm:$0xf] }
 0x30f   :  { %v3176_v54 = vor.u32 %v4013_v48, %v3175_v47  ;;  %v3231_v47 = vld [vmem:[%s6198_s5 + $0x1c8] sm:$0xf]  ;;  %v4027_v48 = vld [vmem:[%s6198_s5 + $0x1e0] sm:$0xf0] }
 0x34d   :  { %v672_v3 = vpop.f32.mrf.mxu0  ;;  %v686_v4 = vpop.f32.mrf.mxu1 }
 0x34e   :  { %v673_v11 = vadd.f32 %v672_v3, %v308_v7  ;;  %v3148_v3 = vor.u32 %v4006_v59, %v3147_v58  ;;  %v4118_v58 = vld [vmem:[%s6198_s5 + $0x4b8] sm:$0xf0]  ;;  %v3232_v59 = vor.u32 %v4027_v48, %v3231_v47  ;;  %v3877_v47 = vld [vmem:[%s6198_s5 + $0x6ec] sm:$0xf0] }
 0x350   :  { %v687_v18 = vadd.f32 %v686_v4, %v673_v11  ;;  %v4048_v4 = vld [vmem:[%s6198_s5 + $0x288] sm:$0xf0] }
 0x351   :  { %v3316_v16 = vor.u32 %v4048_v4, %v3315_v1  ;;  %v3007_v4 = vld [vmem:[%s6198_s5 + $0x8] sm:$0xf] }
 0x352   :  { %v644_v12 = vpop.f32.mrf.mxu2  ;;  %v658_v13 = vpop.f32.mrf.mxu3  ;;  %v748_v24 = vmax.f32 %v687_v18, 0.0 }
 0x353   :  { %v645_v20 = vadd.f32 %v644_v12, %v307_v14 }
 0x355   :  { %v674_v15 = vpop.f32.mrf.mxu0  ;;  %v688_v17 = vpop.f32.mrf.mxu1  ;;  %v659_v28 = vadd.f32 %v658_v13, %v645_v20  ;;  %v4041_v20 = vld [vmem:[%s6198_s5 + $0x250] sm:$0xf0] }
 0x356   :  { %v675_v19 = vadd.f32 %v674_v15, %v308_v7  ;;  %v3119_v7 = vld [vmem:[%s6198_s5 + $0xe8] sm:$0xf]  ;;  %v3287_v15 = vld [vmem:[%s6198_s5 + $0x238] sm:$0xf] }
 0x357   :  { %v747_v40 = vmax.f32 %v659_v28, 0.0 }
 0x358   :  { %v689_v21 = vadd.f32 %v688_v17, %v675_v19  ;;  %v3120_v19 = vor.u32 %v3999_v8, %v3119_v7  ;;  %v4111_v7 = vld [vmem:[%s6198_s5 + $0x480] sm:$0xf0] }
 0x35a   :  { %v752_v25 = vmax.f32 %v689_v21, 0.0  ;;  %v646_v26 = vpop.f32.mrf.mxu2  ;;  %v660_v27 = vpop.f32.mrf.mxu3  ;;  %v3847_v21 = vld [vmem:[%s6198_s5 + $0x698] sm:$0xf] }
 0x35b   :  { %v647_v29 = vadd.f32 %v646_v26, %v307_v14  ;;  %v3876_v14 = vor.u32 %v4188_v6, %v3875_v5  ;;  %v3651_v26 = vld [vmem:[%s6198_s5 + $0x510] sm:$0xf]  ;;  %v3848_v32 = vor.u32 %v4181_v22, %v3847_v21  ;;  %v3971_v5 = vld [vmem:[%s6198_s5 + $0x20] sm:$0xf0]  ;;  %v3567_v6 = vld [vmem:[%s6198_s5 + $0x468] sm:$0xf] }
 0x35c   :  { %v5183_v31 = vpack.c.bf16 %v752_v25, %v748_v24  ;;  %v3091_v24 = vld [vmem:[%s6198_s5 + $0xb0] sm:$0xf]  ;;  %v3992_v25 = vld [vmem:[%s6198_s5 + $0xc8] sm:$0xf0] }
 0x35d   :  { %v661_v34 = vadd.f32 %v660_v27, %v647_v29  ;;  %v728_v35 = vpop.f32.mrf.mxu0  ;;  %v742_v36 = vpop.f32.mrf.mxu1  ;;  %v4132_v27 = vld [vmem:[%s6198_s5 + $0x528] sm:$0xf0]  ;;  %v3092_v38 = vor.u32 %v3992_v25, %v3091_v24  ;;  %v3177_v24 = vld [vmem:[%s6198_s5 + $0x174] sm:$0xf0] }
 0x35e   :  { %2208 = vmatmul.bf16.vlgmr.msrb.gmra.mxu3 %v5183_v31  ;;  %v729_v49 = vadd.f32 %v728_v35, %v310_v39  ;;  %v3819_v35 = vld [vmem:[%s6198_s5 + $0x660] sm:$0xf]  ;;  %v4104_v21 = vld [vmem:[%s6198_s5 + $0x448] sm:$0xf0] }
 0x35f   :  { %v751_v41 = vmax.f32 %v661_v34, 0.0  ;;  %2312 = vmatpush.bf16.msrb.mxu3 %v3428_v30  ;;  %v3288_v30 = vor.u32 %v4041_v20, %v3287_v15  ;;  %v4034_v34 = vld [vmem:[%s6198_s5 + $0x218] sm:$0xf0]  ;;  %v4059_v15 = vld [vmem:[%s6198_s5 + $0x2e4] sm:$0xf] }
 0x360   :  { %v743_v60 = vadd.f32 %v742_v36, %v729_v49  ;;  %v4174_v36 = vld [vmem:[%s6198_s5 + $0x678] sm:$0xf0]  ;;  %v3260_v44 = vor.u32 %v4034_v34, %v3259_v33  ;;  %v3791_v49 = vld [vmem:[%s6198_s5 + $0x628] sm:$0xf]  ;;  %v3539_v20 = vld [vmem:[%s6198_s5 + $0x430] sm:$0xf] }
 0x361   :  { %v5205_v46 = vpack.c.bf16 %v751_v41, %v747_v40  ;;  %v3063_v40 = vld [vmem:[%s6198_s5 + $0x78] sm:$0xf]  ;;  %v3985_v41 = vld [vmem:[%s6198_s5 + $0x90] sm:$0xf0]  ;;  %v3820_v45 = vor.u32 %v4174_v36, %v3819_v35  ;;  %v4003_v36 = vld [vmem:[%s6198_s5 + $0x124] sm:$0xf] }
 0x362   :  { %v700_v50 = vpop.f32.mrf.mxu2  ;;  %v714_v51 = vpop.f32.mrf.mxu3  ;;  %v750_v9 = vmax.f32 %v743_v60, 0.0  ;;  %v3511_v33 = vld [vmem:[%s6198_s5 + $0x3f8] sm:$0xf]  ;;  %v4097_v34 = vld [vmem:[%s6198_s5 + $0x410] sm:$0xf0] }
 0x363   :  { %2313 = vmatpush.bf16.msrb.mxu3 %v3400_v42  ;;  %2194 = vmatmul.bf16.vlgmr.msrb.gmra.mxu2 %v5205_v46  ;;  %v701_v62 = vadd.f32 %v700_v50, %v309_v52  ;;  %v3623_v42 = vld [vmem:[%s6198_s5 + $0x4d8] sm:$0xf]  ;;  %v4167_v50 = vld [vmem:[%s6198_s5 + $0x640] sm:$0xf0] }
 0x364   :  { %2298 = vmatpush.bf16.msrb.mxu2 %v3204_v43  ;;  %v4125_v43 = vld [vmem:[%s6198_s5 + $0x4f0] sm:$0xf0]  ;;  %v3792_v60 = vor.u32 %v4167_v50, %v3791_v49  ;;  %v3483_v49 = vld [vmem:[%s6198_s5 + $0x3c0] sm:$0xf]  ;;  %v4090_v50 = vld [vmem:[%s6198_s5 + $0x3d8] sm:$0xf0] }
 0x365   :  { %v730_v57 = vpop.f32.mrf.mxu0  ;;  %v744_v63 = vpop.f32.mrf.mxu1  ;;  %v715_v12 = vadd.f32 %v714_v51, %v701_v62  ;;  %v3064_v51 = vor.u32 %v3985_v41, %v3063_v40  ;;  %v3763_v62 = vld [vmem:[%s6198_s5 + $0x5f0] sm:$0xf]  ;;  %v3679_v40 = vld [vmem:[%s6198_s5 + $0x548] sm:$0xf]  ;;  %v4139_v41 = vld [vmem:[%s6198_s5 + $0x560] sm:$0xf0] }
 0x366   :  { %v731_v61 = vadd.f32 %v730_v57, %v310_v39  ;;  %v3652_v39 = vor.u32 %v4132_v27, %v3651_v26  ;;  %v3595_v57 = vld [vmem:[%s6198_s5 + $0x4a0] sm:$0xf]  ;;  %v4146_v27 = vld [vmem:[%s6198_s5 + $0x598] sm:$0xf0] }
 0x367   :  { %2314 = vmatpush.bf16.msrb.mxu3 %v3372_v53  ;;  %v749_v28 = vmax.f32 %v715_v12, 0.0  ;;  %v4073_v53 = vld [vmem:[%s6198_s5 + $0x354] sm:$0xf]  ;;  %v3596_v1 = vor.u32 %v4118_v58, %v3595_v57  ;;  %v3735_v12 = vld [vmem:[%s6198_s5 + $0x5b8] sm:$0xf]  ;;  %v3484_v57 = vor.u32 %v4090_v50, %v3483_v49 }
 0x368   :  { %v745_v2 = vadd.f32 %v744_v63, %v731_v61  ;;  %2299 = vmatpush.bf16.msrb.mxu2 %v3176_v54  ;;  %v3429_v54 = vld [vmem:[%s6198_s5 + $0x36c] sm:$0xf0]  ;;  %v4160_v63 = vld [vmem:[%s6198_s5 + $0x608] sm:$0xf0]  ;;  %v3707_v26 = vld [vmem:[%s6198_s5 + $0x580] sm:$0xf] }
 0x369   :  { %v3432_v61 = vor.u32 %v4073_v53, %v3429_v54  ;;  %v3764_v8 = vor.u32 %v4160_v63, %v3763_v62  ;;  %v3708_v35 = vor.u32 %v4146_v27, %v3707_v26  ;;  %v3121_v53 = vld [vmem:[%s6198_s5 + $0x104] sm:$0xf0]  ;;  %v3289_v58 = vld [vmem:[%s6198_s5 + $0x254] sm:$0xf0]  ;;  %v4083_v63 = vld [vmem:[%s6198_s5 + $0x3a0] sm:$0xf0] }
 0x36a   :  { %v754_v10 = vmax.f32 %v745_v2, 0.0  ;;  %v702_v11 = vpop.f32.mrf.mxu2  ;;  %v716_v18 = vpop.f32.mrf.mxu3  ;;  %v4066_v2 = vld [vmem:[%s6198_s5 + $0x31c] sm:$0xf]  ;;  %v3455_v62 = vld [vmem:[%s6198_s5 + $0x388] sm:$0xf] }
 0x36b   :  { %2315 = vmatpush.bf16.msrb.mxu3 %v3344_v0  ;;  %v703_v13 = vadd.f32 %v702_v11, %v309_v52  ;;  %v3624_v52 = vor.u32 %v4125_v43, %v3623_v42  ;;  %v3036_v0 = vor.u32 %v3978_v56, %v3035_v55  ;;  %v4045_v42 = vld [vmem:[%s6198_s5 + $0x274] sm:$0xf]  ;;  %v3512_v43 = vor.u32 %v4097_v34, %v3511_v33  ;;  %v4038_v56 = vld [vmem:[%s6198_s5 + $0x23c] sm:$0xf]  ;;  %v3435_v26 = vld [vmem:[%s6198_s5 + $0x358] sm:$0xf] }
 0x36c   :  { %v5248_v17 = vpack.c.bf16 %v754_v10, %v750_v9  ;;  %2300 = vmatpush.bf16.msrb.mxu2 %v3148_v3  ;;  %v3401_v3 = vld [vmem:[%s6198_s5 + $0x334] sm:$0xf0]  ;;  %v4017_v9 = vld [vmem:[%s6198_s5 + $0x194] sm:$0xf]  ;;  %v3205_v10 = vld [vmem:[%s6198_s5 + $0x1ac] sm:$0xf0] }
 0x36d   :  { %v717_v23 = vadd.f32 %v716_v18, %v703_v13  ;;  %v3404_v11 = vor.u32 %v4066_v2, %v3401_v3  ;;  %v4153_v13 = vld [vmem:[%s6198_s5 + $0x5d0] sm:$0xf0]  ;;  %v3373_v18 = vld [vmem:[%s6198_s5 + $0x2fc] sm:$0xf0]  ;;  %v3653_v3 = vld [vmem:[%s6198_s5 + $0x52c] sm:$0xf0] }
 0x36e   :  { %2236 = vmatmul.bf16.vlgmr.msra.gmra.mxu1 %v5248_v17  ;;  %2264 = vmatmul.bf16.vlgmr.msra.gmra.mxu3 %v5183_v31  ;;  %v3736_v22 = vor.u32 %v4153_v13, %v3735_v12  ;;  %v3376_v25 = vor.u32 %v4059_v15, %v3373_v18  ;;  %v4129_v2 = vld [vmem:[%s6198_s5 + $0x514] sm:$0xf]  ;;  %v3982_v13 = vld [vmem:[%s6198_s5 + $0x7c] sm:$0xf]  ;;  %v3625_v15 = vld [vmem:[%s6198_s5 + $0x4f4] sm:$0xf0] }
 0x36f   :  { %v753_v29 = vmax.f32 %v717_v23, 0.0  ;;  %2316 = vmatpush.bf16.msrb.mxu3 %v3316_v16  ;;  %2340 = vmatpush.bf16.msra.mxu1 %v3876_v14  ;;  %v3008_v16 = vor.u32 %v3971_v5, %v3007_v4  ;;  %v3568_v14 = vor.u32 %v4111_v7, %v3567_v6  ;;  %v4010_v23 = vld [vmem:[%s6198_s5 + $0x15c] sm:$0xf]  ;;  %v3292_v4 = vor.u32 %v4038_v56, %v3289_v58  ;;  %v4031_v6 = vld [vmem:[%s6198_s5 + $0x204] sm:$0xf] }
 0x370   :  { %2301 = vmatpush.bf16.msrb.mxu2 %v3120_v19  ;;  %v3208_v19 = vor.u32 %v4017_v9, %v3205_v10  ;;  %v3456_v7 = vor.u32 %v4083_v63, %v3455_v62  ;;  %v4171_v9 = vld [vmem:[%s6198_s5 + $0x664] sm:$0xf]  ;;  %v3821_v10 = vld [vmem:[%s6198_s5 + $0x67c] sm:$0xf0]  ;;  %v3656_v12 = vor.u32 %v4129_v2, %v3653_v3  ;;  %v4077_v27 = vld [vmem:[%s6198_s5 + $0x370] sm:$0xf0] }
 0x371   :  { %v5285_v37 = vpack.c.bf16 %v753_v29, %v749_v28  ;;  %v3540_v28 = vor.u32 %v4104_v21, %v3539_v20  ;;  %v4052_v29 = vld [vmem:[%s6198_s5 + $0x2ac] sm:$0xf]  ;;  %v3233_v21 = vld [vmem:[%s6198_s5 + $0x1e4] sm:$0xf0]  ;;  %v3211_v49 = vld [vmem:[%s6198_s5 + $0x198] sm:$0xf] }
 0x372   :  { %v4024_v20 = vld [vmem:[%s6198_s5 + $0x1cc] sm:$0xf]  ;;  %v4021_v50 = vld [vmem:[%s6198_s5 + $0x1b0] sm:$0xf0]  ;;  %v3379_v56 = vld [vmem:[%s6198_s5 + $0x2e8] sm:$0xf] }
 0x373   :  { %2317 = vmatpush.bf16.msrb.mxu3 %v3288_v30  ;;  %2341 = vmatpush.bf16.msra.mxu1 %v3848_v32  ;;  %v3345_v30 = vld [vmem:[%s6198_s5 + $0x2c4] sm:$0xf0]  ;;  %v3180_v32 = vor.u32 %v4010_v23, %v3177_v24  ;;  %v3236_v33 = vor.u32 %v4024_v20, %v3233_v21  ;;  %v3212_v58 = vor.u32 %v4021_v50, %v3211_v49  ;;  %v3183_v62 = vld [vmem:[%s6198_s5 + $0x160] sm:$0xf]  ;;  %v4014_v63 = vld [vmem:[%s6198_s5 + $0x178] sm:$0xf0] }
 0x374   :  { %2222 = vmatmul.bf16.vlgmr.msra.gmra.mxu0 %v5285_v37  ;;  %2250 = vmatmul.bf16.vlgmr.msra.gmra.mxu2 %v5205_v46  ;;  %v3793_v23 = vld [vmem:[%s6198_s5 + $0x644] sm:$0xf0]  ;;  %v3709_v2 = vld [vmem:[%s6198_s5 + $0x59c] sm:$0xf0]  ;;  %v4189_v20 = vld [vmem:[%s6198_s5 + $0x6f0] sm:$0xf0] }
 0x375   :  { %2302 = vmatpush.bf16.msrb.mxu2 %v3092_v38  ;;  %2326 = vmatpush.bf16.msra.mxu0 %v3652_v39  ;;  %v3149_v38 = vld [vmem:[%s6198_s5 + $0x13c] sm:$0xf0]  ;;  %v3348_v39 = vor.u32 %v4052_v29, %v3345_v30  ;;  %v4115_v30 = vld [vmem:[%s6198_s5 + $0x4a4] sm:$0xf] }
 0x376   :  { %v3152_v48 = vor.u32 %v4003_v36, %v3149_v38  ;;  %v3037_v29 = vld [vmem:[%s6198_s5 + $0x5c] sm:$0xf0]  ;;  %v4157_v36 = vld [vmem:[%s6198_s5 + $0x5f4] sm:$0xf]  ;;  %v3765_v38 = vld [vmem:[%s6198_s5 + $0x60c] sm:$0xf0] }
 0x377   :  { %2318 = vmatpush.bf16.msrb.mxu3 %v3260_v44  ;;  %2342 = vmatpush.bf16.msra.mxu1 %v3820_v45  ;;  %v3317_v44 = vld [vmem:[%s6198_s5 + $0x28c] sm:$0xf0]  ;;  %v4185_v45 = vld [vmem:[%s6198_s5 + $0x6d4] sm:$0xf] }
 0x378   :  { %v3320_v54 = vor.u32 %v4045_v42, %v3317_v44  ;;  %v3880_v55 = vor.u32 %v4185_v45, %v3877_v47  ;;  %v4070_v42 = vld [vmem:[%s6198_s5 + $0x338] sm:$0xf0]  ;;  %v3009_v44 = vld [vmem:[%s6198_s5 + $0x24] sm:$0xf0]  ;;  %v4108_v45 = vld [vmem:[%s6198_s5 + $0x46c] sm:$0xf] }
 0x379   :  { %2303 = vmatpush.bf16.msrb.mxu2 %v3064_v51  ;;  %2327 = vmatpush.bf16.msra.mxu0 %v3624_v52  ;;  %v3680_v51 = vor.u32 %v4139_v41, %v3679_v40  ;;  %v3996_v52 = vld [vmem:[%s6198_s5 + $0xec] sm:$0xf]  ;;  %v3407_v41 = vld [vmem:[%s6198_s5 + $0x320] sm:$0xf]  ;;  %v3569_v47 = vld [vmem:[%s6198_s5 + $0x484] sm:$0xf0] }
 0x37b   :  { %2319 = vmatpush.bf16.msrb.mxu3 %v3232_v59  ;;  %2343 = vmatpush.bf16.msra.mxu1 %v3792_v60  ;;  %v4178_v59 = vld [vmem:[%s6198_s5 + $0x69c] sm:$0xf]  ;;  %v3849_v60 = vld [vmem:[%s6198_s5 + $0x6b4] sm:$0xf0] }
 0x37c   :  { %v3852_v5 = vor.u32 %v4178_v59, %v3849_v60  ;;  %v4101_v59 = vld [vmem:[%s6198_s5 + $0x434] sm:$0xf]  ;;  %v3541_v60 = vld [vmem:[%s6198_s5 + $0x44c] sm:$0xf0] }
 0x37d   :  { %2304 = vmatpush.bf16.msrb.mxu2 %v3036_v0  ;;  %2328 = vmatpush.bf16.msra.mxu0 %v3596_v1  ;;  %v3989_v0 = vld [vmem:[%s6198_s5 + $0xb4] sm:$0xf]  ;;  %v3093_v1 = vld [vmem:[%s6198_s5 + $0xcc] sm:$0xf0]  ;;  %v3544_v3 = vor.u32 %v4101_v59, %v3541_v60  ;;  %v4028_v60 = vld [vmem:[%s6198_s5 + $0x1e8] sm:$0xf0] }
 0x37e   :  { %2292 = vmatmul.bf16.vlgmr.msrb.gmra.mxu1 %v5248_v17  ;;  %2320 = vmatmul.bf16.vlgmr.msrb.gmra.mxu3 %v5183_v31 }
 0x37f   :  { %2368 = vmatpush.bf16.msra.mxu3 %v3432_v61  ;;  %2344 = vmatpush.bf16.msra.mxu1 %v3764_v8  ;;  %v3124_v61 = vor.u32 %v3996_v52, %v3121_v53  ;;  %v3261_v8 = vld [vmem:[%s6198_s5 + $0x21c] sm:$0xf0]  ;;  %v4150_v52 = vld [vmem:[%s6198_s5 + $0x5bc] sm:$0xf]  ;;  %v3737_v53 = vld [vmem:[%s6198_s5 + $0x5d4] sm:$0xf0] }
 0x380   :  { %v3264_v18 = vor.u32 %v4031_v6, %v3261_v8  ;;  %v3184_v6 = vor.u32 %v4014_v63, %v3183_v62  ;;  %v3513_v8 = vld [vmem:[%s6198_s5 + $0x414] sm:$0xf0]  ;;  %v4168_v62 = vld [vmem:[%s6198_s5 + $0x648] sm:$0xf0] }
 0x381   :  { %2305 = vmatpush.bf16.msrb.mxu2 %v3008_v16  ;;  %2329 = vmatpush.bf16.msra.mxu0 %v3568_v14  ;;  %v3065_v16 = vld [vmem:[%s6198_s5 + $0x94] sm:$0xf0]  ;;  %v4122_v14 = vld [vmem:[%s6198_s5 + $0x4dc] sm:$0xf] }
 0x382   :  { %v3068_v24 = vor.u32 %v3982_v13, %v3065_v16  ;;  %v4136_v13 = vld [vmem:[%s6198_s5 + $0x54c] sm:$0xf]  ;;  %v3681_v16 = vld [vmem:[%s6198_s5 + $0x564] sm:$0xf0] }
 0x383   :  { %2369 = vmatpush.bf16.msra.mxu3 %v3404_v11  ;;  %2345 = vmatpush.bf16.msra.mxu1 %v3736_v22  ;;  %v3096_v11 = vor.u32 %v3989_v0, %v3093_v1  ;;  %v4164_v22 = vld [vmem:[%s6198_s5 + $0x62c] sm:$0xf]  ;;  %v4143_v1 = vld [vmem:[%s6198_s5 + $0x584] sm:$0xf] }
 0x384   :  { %2278 = vmatmul.bf16.vlgmr.msrb.gmra.mxu0 %v5285_v37  ;;  %2306 = vmatmul.bf16.vlgmr.msrb.gmra.mxu2 %v5205_v46  ;;  %v3796_v34 = vor.u32 %v4164_v22, %v3793_v23  ;;  %v4087_v22 = vld [vmem:[%s6198_s5 + $0x3c4] sm:$0xf]  ;;  %v3485_v23 = vld [vmem:[%s6198_s5 + $0x3dc] sm:$0xf0] }
 0x385   :  { %2354 = vmatpush.bf16.msra.mxu2 %v3208_v19  ;;  %2330 = vmatpush.bf16.msra.mxu0 %v3540_v28  ;;  %v3824_v19 = vor.u32 %v4171_v9, %v3821_v10  ;;  %v3975_v28 = vld [vmem:[%s6198_s5 + $0x44] sm:$0xf]  ;;  %v3712_v9 = vor.u32 %v4143_v1, %v3709_v2  ;;  %v3155_v10 = vld [vmem:[%s6198_s5 + $0x128] sm:$0xf]  ;;  %v4074_v1 = vld [vmem:[%s6198_s5 + $0x35c] sm:$0xf] }
 0x386   :  { %v3437_v2 = vld [vmem:[%s6198_s5 + $0x374] sm:$0xf0] }
 0x387   :  { %2370 = vmatpush.bf16.msra.mxu3 %v3376_v25  ;;  %2346 = vmatpush.bf16.msra.mxu1 %v3708_v35  ;;  %v3628_v25 = vor.u32 %v4122_v14, %v3625_v15  ;;  %v3436_v35 = vor.u32 %v4077_v27, %v3435_v26  ;;  %v3323_v14 = vld [vmem:[%s6198_s5 + $0x278] sm:$0xf]  ;;  %v4000_v26 = vld [vmem:[%s6198_s5 + $0x108] sm:$0xf0] }
 0x389   :  { %2355 = vmatpush.bf16.msra.mxu2 %v3180_v32  ;;  %2331 = vmatpush.bf16.msra.mxu0 %v3512_v43  ;;  %v3597_v32 = vld [vmem:[%s6198_s5 + $0x4bc] sm:$0xf0]  ;;  %v3968_v43 = vld [vmem:[%s6198_s5 + $0xc] sm:$0xf] }
 0x38a   :  { %v3600_v40 = vor.u32 %v4115_v30, %v3597_v32  ;;  %v3488_v30 = vor.u32 %v4087_v22, %v3485_v23  ;;  %v4042_v32 = vld [vmem:[%s6198_s5 + $0x258] sm:$0xf0]  ;;  %v3213_v22 = vld [vmem:[%s6198_s5 + $0x1b4] sm:$0xf0] }
 0x38b   :  { %2371 = vmatpush.bf16.msra.mxu3 %v3348_v39  ;;  %2347 = vmatpush.bf16.msra.mxu1 %v3680_v51  ;;  %v3040_v39 = vor.u32 %v3975_v28, %v3037_v29  ;;  %v3408_v51 = vor.u32 %v4070_v42, %v3407_v41  ;;  %v3295_v29 = vld [vmem:[%s6198_s5 + $0x240] sm:$0xf]  ;;  %v3659_v41 = vld [vmem:[%s6198_s5 + $0x518] sm:$0xf]  ;;  %v4133_v42 = vld [vmem:[%s6198_s5 + $0x530] sm:$0xf0] }
 0x38c   :  { %v3660_v50 = vor.u32 %v4133_v42, %v3659_v41  ;;  %v3715_v41 = vld [vmem:[%s6198_s5 + $0x588] sm:$0xf]  ;;  %v4147_v42 = vld [vmem:[%s6198_s5 + $0x5a0] sm:$0xf0] }
 0x38d   :  { %2356 = vmatpush.bf16.msra.mxu2 %v3152_v48  ;;  %2332 = vmatpush.bf16.msra.mxu0 %v3484_v57  ;;  %v3768_v48 = vor.u32 %v4157_v36, %v3765_v38  ;;  %v4063_v57 = vld [vmem:[%s6198_s5 + $0x300] sm:$0xf0]  ;;  %v4080_v36 = vld [vmem:[%s6198_s5 + $0x38c] sm:$0xf]  ;;  %v3457_v38 = vld [vmem:[%s6198_s5 + $0x3a4] sm:$0xf0] }
 0x38e   :  { %2348 = vmatmul.bf16.vlgmr.msra.gmra.mxu1 %v5248_v17  ;;  %v3380_v0 = vor.u32 %v4063_v57, %v3379_v56  ;;  %v4126_v56 = vld [vmem:[%s6198_s5 + $0x4f8] sm:$0xf0] }
 0x38f   :  { %2372 = vmatpush.bf16.msra.mxu3 %v3320_v54  ;;  %2396 = vmatpush.bf16.msrb.mxu1 %v3880_v55  ;;  %v3012_v54 = vor.u32 %v3968_v43, %v3009_v44  ;;  %v3572_v55 = vor.u32 %v4108_v45, %v3569_v47  ;;  %v3296_v43 = vor.u32 %v4042_v32, %v3295_v29  ;;  %v3267_v47 = vld [vmem:[%s6198_s5 + $0x208] sm:$0xf]  ;;  %v4060_v29 = vld [vmem:[%s6198_s5 + $0x2ec] sm:$0xf] }
 0x390   :  { %v3460_v45 = vor.u32 %v4080_v36, %v3457_v38  ;;  %v3381_v32 = vld [vmem:[%s6198_s5 + $0x304] sm:$0xf0]  ;;  %v3185_v36 = vld [vmem:[%s6198_s5 + $0x17c] sm:$0xf0] }
 0x391   :  { %2357 = vmatpush.bf16.msra.mxu2 %v3124_v61  ;;  %2333 = vmatpush.bf16.msra.mxu0 %v3456_v7  ;;  %v3740_v61 = vor.u32 %v4150_v52, %v3737_v53  ;;  %v4094_v7 = vld [vmem:[%s6198_s5 + $0x3fc] sm:$0xf]  ;;  %v4175_v52 = vld [vmem:[%s6198_s5 + $0x680] sm:$0xf0]  ;;  %v3071_v53 = vld [vmem:[%s6198_s5 + $0x80] sm:$0xf] }
 0x392   :  { %v3516_v15 = vor.u32 %v4094_v7, %v3513_v8 }
 0x393   :  { %2373 = vmatpush.bf16.msra.mxu3 %v3292_v4  ;;  %2397 = vmatpush.bf16.msrb.mxu1 %v3852_v5  ;;  %v3351_v4 = vld [vmem:[%s6198_s5 + $0x2b0] sm:$0xf]  ;;  %v4056_v5 = vld [vmem:[%s6198_s5 + $0x2c8] sm:$0xf0] }
 0x394   :  { %2334 = vmatmul.bf16.vlgmr.msra.gmra.mxu0 %v5285_v37 }
 0x395   :  { %2358 = vmatpush.bf16.msra.mxu2 %v3096_v11  ;;  %2382 = vmatpush.bf16.msrb.mxu0 %v3656_v12  ;;  %v4007_v11 = vld [vmem:[%s6198_s5 + $0x140] sm:$0xf0]  ;;  %v3352_v12 = vor.u32 %v4056_v5, %v3351_v4  ;;  %v3603_v5 = vld [vmem:[%s6198_s5 + $0x4a8] sm:$0xf] }
 0x396   :  { %v3156_v21 = vor.u32 %v4007_v11, %v3155_v10  ;;  %v3979_v4 = vld [vmem:[%s6198_s5 + $0x60] sm:$0xf0]  ;;  %v3771_v10 = vld [vmem:[%s6198_s5 + $0x5f8] sm:$0xf]  ;;  %v4161_v11 = vld [vmem:[%s6198_s5 + $0x610] sm:$0xf0] }
 0x397   :  { %2374 = vmatpush.bf16.msra.mxu3 %v3264_v18  ;;  %2398 = vmatpush.bf16.msrb.mxu1 %v3824_v19  ;;  %v4049_v18 = vld [vmem:[%s6198_s5 + $0x290] sm:$0xf0]  ;;  %v3883_v19 = vld [vmem:[%s6198_s5 + $0x6d8] sm:$0xf]  ;;  %v3772_v23 = vor.u32 %v4161_v11, %v3771_v10  ;;  %v3463_v10 = vld [vmem:[%s6198_s5 + $0x390] sm:$0xf] }
 0x398   :  { %v3324_v27 = vor.u32 %v4049_v18, %v3323_v14  ;;  %v3884_v28 = vor.u32 %v4189_v20, %v3883_v19  ;;  %v3409_v14 = vld [vmem:[%s6198_s5 + $0x33c] sm:$0xf0]  ;;  %v3972_v18 = vld [vmem:[%s6198_s5 + $0x28] sm:$0xf0]  ;;  %v3575_v19 = vld [vmem:[%s6198_s5 + $0x470] sm:$0xf] }
 0x399   :  { %2359 = vmatpush.bf16.msra.mxu2 %v3068_v24  ;;  %2383 = vmatpush.bf16.msrb.mxu0 %v3628_v25  ;;  %v3684_v24 = vor.u32 %v4136_v13, %v3681_v16  ;;  %v3127_v25 = vld [vmem:[%s6198_s5 + $0xf0] sm:$0xf]  ;;  %v4067_v16 = vld [vmem:[%s6198_s5 + $0x324] sm:$0xf]  ;;  %v4112_v20 = vld [vmem:[%s6198_s5 + $0x488] sm:$0xf0] }
 0x39a   :  { %v4084_v11 = vld [vmem:[%s6198_s5 + $0x3a8] sm:$0xf0] }
 0x39b   :  { %2375 = vmatpush.bf16.msra.mxu3 %v3236_v33  ;;  %2399 = vmatpush.bf16.msrb.mxu1 %v3796_v34  ;;  %v3855_v33 = vld [vmem:[%s6198_s5 + $0x6a0] sm:$0xf]  ;;  %v4182_v34 = vld [vmem:[%s6198_s5 + $0x6b8] sm:$0xf0] }
 0x39c   :  { %v3856_v44 = vor.u32 %v4182_v34, %v3855_v33  ;;  %v3547_v33 = vld [vmem:[%s6198_s5 + $0x438] sm:$0xf]  ;;  %v4105_v34 = vld [vmem:[%s6198_s5 + $0x450] sm:$0xf0] }
 0x39d   :  { %2360 = vmatpush.bf16.msra.mxu2 %v3040_v39  ;;  %2384 = vmatpush.bf16.msrb.mxu0 %v3600_v40  ;;  %v3099_v39 = vld [vmem:[%s6198_s5 + $0xb8] sm:$0xf]  ;;  %v3993_v40 = vld [vmem:[%s6198_s5 + $0xd0] sm:$0xf0] }
 0x39e   :  { %2376 = vmatmul.bf16.vlgmr.msra.gmra.mxu3 %v5183_v31  ;;  %v3100_v49 = vor.u32 %v3993_v40, %v3099_v39  ;;  %v3384_v39 = vor.u32 %v4060_v29, %v3381_v32  ;;  %v3548_v40 = vor.u32 %v4105_v34, %v3547_v33  ;;  %v3633_v29 = vld [vmem:[%s6198_s5 + $0x4fc] sm:$0xf0]  ;;  %v4025_v32 = vld [vmem:[%s6198_s5 + $0x1d4] sm:$0xf] }
 0x39f   :  { %2424 = vmatpush.bf16.msrb.mxu3 %v3436_v35  ;;  %2400 = vmatpush.bf16.msrb.mxu1 %v3768_v48  ;;  %v3128_v35 = vor.u32 %v4000_v26, %v3127_v25  ;;  %v4035_v48 = vld [vmem:[%s6198_s5 + $0x220] sm:$0xf0]  ;;  %v3576_v26 = vor.u32 %v4112_v20, %v3575_v19  ;;  %v3464_v19 = vor.u32 %v4084_v11, %v3463_v10 }
 0x3a0   :  { %v3268_v57 = vor.u32 %v4035_v48, %v3267_v47  ;;  %v3519_v47 = vld [vmem:[%s6198_s5 + $0x400] sm:$0xf]  ;;  %v4098_v48 = vld [vmem:[%s6198_s5 + $0x418] sm:$0xf0]  ;;  %v4015_v10 = vld [vmem:[%s6198_s5 + $0x180] sm:$0xf0] }
 0x3a1   :  { %2361 = vmatpush.bf16.msra.mxu2 %v3012_v54  ;;  %2385 = vmatpush.bf16.msrb.mxu0 %v3572_v55  ;;  %v3986_v54 = vld [vmem:[%s6198_s5 + $0x98] sm:$0xf0]  ;;  %v3631_v55 = vld [vmem:[%s6198_s5 + $0x4e0] sm:$0xf] }
 0x3a2   :  { %v3072_v63 = vor.u32 %v3986_v54, %v3071_v53  ;;  %v3520_v54 = vor.u32 %v4098_v48, %v3519_v47 }
 0x3a3   :  { %2425 = vmatpush.bf16.msrb.mxu3 %v3408_v51  ;;  %2401 = vmatpush.bf16.msrb.mxu1 %v3740_v61  ;;  %v3827_v51 = vld [vmem:[%s6198_s5 + $0x668] sm:$0xf]  ;;  %v3799_v61 = vld [vmem:[%s6198_s5 + $0x630] sm:$0xf] }
 0x3a4   :  { %2362 = vmatmul.bf16.vlgmr.msra.gmra.mxu2 %v5205_v46  ;;  %v3828_v59 = vor.u32 %v4175_v52, %v3827_v51  ;;  %v3800_v8 = vor.u32 %v4168_v62, %v3799_v61  ;;  %v3716_v51 = vor.u32 %v4147_v42, %v3715_v41  ;;  %v3687_v52 = vld [vmem:[%s6198_s5 + $0x550] sm:$0xf]  ;;  %v3491_v61 = vld [vmem:[%s6198_s5 + $0x3c8] sm:$0xf]  ;;  %v4091_v62 = vld [vmem:[%s6198_s5 + $0x3e0] sm:$0xf0] }
 0x3a5   :  { %2410 = vmatpush.bf16.msrb.mxu2 %v3212_v58  ;;  %2386 = vmatpush.bf16.msrb.mxu0 %v3544_v3  ;;  %v3239_v58 = vld [vmem:[%s6198_s5 + $0x1d0] sm:$0xf]  ;;  %v3043_v3 = vld [vmem:[%s6198_s5 + $0x48] sm:$0xf]  ;;  %v4078_v41 = vld [vmem:[%s6198_s5 + $0x378] sm:$0xf0] }
 0x3a6   :  { %v3240_v7 = vor.u32 %v4028_v60, %v3239_v58  ;;  %v3885_v60 = vld [vmem:[%s6198_s5 + $0x6f4] sm:$0xf0]  ;;  %v3976_v42 = vld [vmem:[%s6198_s5 + $0x4c] sm:$0xf] }
 0x3a7   :  { %2426 = vmatpush.bf16.msrb.mxu3 %v3380_v0  ;;  %2402 = vmatpush.bf16.msrb.mxu1 %v3712_v9  ;;  %v3632_v0 = vor.u32 %v4126_v56, %v3631_v55  ;;  %v3440_v9 = vor.u32 %v4074_v1, %v3437_v2  ;;  %v4140_v55 = vld [vmem:[%s6198_s5 + $0x568] sm:$0xf0]  ;;  %v4046_v56 = vld [vmem:[%s6198_s5 + $0x27c] sm:$0xf] }
 0x3a8   :  { %v3688_v1 = vor.u32 %v4140_v55, %v3687_v52  ;;  %v4071_v55 = vld [vmem:[%s6198_s5 + $0x340] sm:$0xf0] }
 0x3a9   :  { %2411 = vmatpush.bf16.msrb.mxu2 %v3184_v6  ;;  %2387 = vmatpush.bf16.msrb.mxu0 %v3516_v15  ;;  %v4119_v6 = vld [vmem:[%s6198_s5 + $0x4c0] sm:$0xf0]  ;;  %v3015_v15 = vld [vmem:[%s6198_s5 + $0x10] sm:$0xf] }
 0x3aa   :  { %v3604_v13 = vor.u32 %v4119_v6, %v3603_v5  ;;  %v3016_v25 = vor.u32 %v3972_v18, %v3015_v15  ;;  %v3297_v5 = vld [vmem:[%s6198_s5 + $0x25c] sm:$0xf0]  ;;  %v3492_v6 = vor.u32 %v4091_v62, %v3491_v61  ;;  %v4022_v61 = vld [vmem:[%s6198_s5 + $0x1b8] sm:$0xf0] }
 0x3ab   :  { %2427 = vmatpush.bf16.msrb.mxu3 %v3352_v12  ;;  %2403 = vmatpush.bf16.msrb.mxu1 %v3684_v24  ;;  %v3044_v12 = vor.u32 %v3979_v4, %v3043_v3  ;;  %v3412_v24 = vor.u32 %v4067_v16, %v3409_v14  ;;  %v4039_v4 = vld [vmem:[%s6198_s5 + $0x244] sm:$0xf]  ;;  %v4130_v16 = vld [vmem:[%s6198_s5 + $0x51c] sm:$0xf]  ;;  %v3661_v14 = vld [vmem:[%s6198_s5 + $0x534] sm:$0xf0] }
 0x3ac   :  { %v3300_v15 = vor.u32 %v4039_v4, %v3297_v5  ;;  %v3387_v4 = vld [vmem:[%s6198_s5 + $0x2f0] sm:$0xf] }
 0x3ad   :  { %2412 = vmatpush.bf16.msrb.mxu2 %v3156_v21  ;;  %2388 = vmatpush.bf16.msrb.mxu0 %v3488_v30  ;;  %v4018_v21 = vld [vmem:[%s6198_s5 + $0x19c] sm:$0xf] }
 0x3ae   :  { %2404 = vmatmul.bf16.vlgmr.msrb.gmra.mxu1 %v5248_v17  ;;  %v3216_v30 = vor.u32 %v4018_v21, %v3213_v22  ;;  %v4032_v21 = vld [vmem:[%s6198_s5 + $0x20c] sm:$0xf]  ;;  %v3269_v22 = vld [vmem:[%s6198_s5 + $0x224] sm:$0xf0] }
 0x3af   :  { %2428 = vmatpush.bf16.msrb.mxu3 %v3324_v27  ;;  %2452 = vmatpush.bf16.msra.mxu1 %v3884_v28  ;;  %v3743_v27 = vld [vmem:[%s6198_s5 + $0x5c0] sm:$0xf]  ;;  %v4154_v28 = vld [vmem:[%s6198_s5 + $0x5d8] sm:$0xf0] }
 0x3b0   :  { %v3744_v38 = vor.u32 %v4154_v28, %v3743_v27  ;;  %v3073_v27 = vld [vmem:[%s6198_s5 + $0x9c] sm:$0xf0]  ;;  %v4123_v28 = vld [vmem:[%s6198_s5 + $0x4e4] sm:$0xf] }
 0x3b1   :  { %2413 = vmatpush.bf16.msrb.mxu2 %v3128_v35  ;;  %2389 = vmatpush.bf16.msrb.mxu0 %v3460_v45  ;;  %v4011_v35 = vld [vmem:[%s6198_s5 + $0x164] sm:$0xf]  ;;  %v3353_v45 = vld [vmem:[%s6198_s5 + $0x2cc] sm:$0xf0] }
 0x3b3   :  { %2429 = vmatpush.bf16.msrb.mxu3 %v3296_v43  ;;  %2453 = vmatpush.bf16.msra.mxu1 %v3856_v44  ;;  %v4053_v43 = vld [vmem:[%s6198_s5 + $0x2b4] sm:$0xf]  ;;  %v3188_v44 = vor.u32 %v4011_v35, %v3185_v36  ;;  %v3241_v35 = vld [vmem:[%s6198_s5 + $0x1ec] sm:$0xf0] }
 0x3b4   :  { %2390 = vmatmul.bf16.vlgmr.msrb.gmra.mxu0 %v5285_v37  ;;  %v3356_v53 = vor.u32 %v4053_v43, %v3353_v45  ;;  %v4165_v36 = vld [vmem:[%s6198_s5 + $0x634] sm:$0xf]  ;;  %v3045_v43 = vld [vmem:[%s6198_s5 + $0x64] sm:$0xf0]  ;;  %v3244_v47 = vor.u32 %v4025_v32, %v3241_v35  ;;  %v4088_v35 = vld [vmem:[%s6198_s5 + $0x3cc] sm:$0xf] }
 0x3b5   :  { %2414 = vmatpush.bf16.msrb.mxu2 %v3100_v49  ;;  %2438 = vmatpush.bf16.msra.mxu0 %v3660_v50  ;;  %v4004_v49 = vld [vmem:[%s6198_s5 + $0x12c] sm:$0xf]  ;;  %v3157_v50 = vld [vmem:[%s6198_s5 + $0x144] sm:$0xf0]  ;;  %v3048_v52 = vor.u32 %v3976_v42, %v3045_v43  ;;  %v4043_v42 = vld [vmem:[%s6198_s5 + $0x260] sm:$0xf0] }
 0x3b6   :  { %v3160_v58 = vor.u32 %v4004_v49, %v3157_v50  ;;  %v3605_v45 = vld [vmem:[%s6198_s5 + $0x4c4] sm:$0xf0]  ;;  %v4158_v50 = vld [vmem:[%s6198_s5 + $0x5fc] sm:$0xf] }
 0x3b7   :  { %2430 = vmatpush.bf16.msrb.mxu3 %v3268_v57  ;;  %2454 = vmatpush.bf16.msra.mxu1 %v3828_v59  ;;  %v3325_v57 = vld [vmem:[%s6198_s5 + $0x294] sm:$0xf0]  ;;  %v4186_v59 = vld [vmem:[%s6198_s5 + $0x6dc] sm:$0xf]  ;;  %v3863_v43 = vld [vmem:[%s6198_s5 + $0x6a8] sm:$0xf] }
 0x3b8   :  { %v3328_v2 = vor.u32 %v4046_v56, %v3325_v57  ;;  %v3888_v3 = vor.u32 %v4186_v59, %v3885_v60  ;;  %v3969_v56 = vld [vmem:[%s6198_s5 + $0x14] sm:$0xf]  ;;  %v3017_v57 = vld [vmem:[%s6198_s5 + $0x2c] sm:$0xf0]  ;;  %v3219_v60 = vld [vmem:[%s6198_s5 + $0x1a0] sm:$0xf] }
 0x3b9   :  { %2415 = vmatpush.bf16.msrb.mxu2 %v3072_v63  ;;  %2439 = vmatpush.bf16.msra.mxu0 %v3632_v0  ;;  %v3997_v63 = vld [vmem:[%s6198_s5 + $0xf4] sm:$0xf]  ;;  %v3129_v0 = vld [vmem:[%s6198_s5 + $0x10c] sm:$0xf0]  ;;  %v3220_v5 = vor.u32 %v4022_v61, %v3219_v60 }
 0x3ba   :  { %v3577_v59 = vld [vmem:[%s6198_s5 + $0x48c] sm:$0xf0] }
 0x3bb   :  { %2431 = vmatpush.bf16.msrb.mxu3 %v3240_v7  ;;  %2455 = vmatpush.bf16.msra.mxu1 %v3800_v8  ;;  %v3132_v7 = vor.u32 %v3997_v63, %v3129_v0  ;;  %v4179_v8 = vld [vmem:[%s6198_s5 + $0x6a4] sm:$0xf]  ;;  %v3020_v0 = vor.u32 %v3969_v56, %v3017_v57  ;;  %v3667_v56 = vld [vmem:[%s6198_s5 + $0x520] sm:$0xf]  ;;  %v4134_v57 = vld [vmem:[%s6198_s5 + $0x538] sm:$0xf0] }
 0x3bd   :  { %2416 = vmatpush.bf16.msrb.mxu2 %v3044_v12  ;;  %2440 = vmatpush.bf16.msra.mxu0 %v3604_v13  ;;  %v3990_v12 = vld [vmem:[%s6198_s5 + $0xbc] sm:$0xf]  ;;  %v3101_v13 = vld [vmem:[%s6198_s5 + $0xd4] sm:$0xf0] }
 0x3be   :  { %2432 = vmatmul.bf16.vlgmr.msrb.gmra.mxu3 %v5183_v31  ;;  %v3104_v20 = vor.u32 %v3990_v12, %v3101_v13 }
 0x3bf   :  { %2480 = vmatpush.bf16.msra.mxu3 %v3440_v9  ;;  %2456 = vmatpush.bf16.msra.mxu1 %v3772_v23  ;;  %v3857_v9 = vld [vmem:[%s6198_s5 + $0x6bc] sm:$0xf0]  ;;  %v4172_v23 = vld [vmem:[%s6198_s5 + $0x66c] sm:$0xf] }
 0x3c0   :  { %v3860_v18 = vor.u32 %v4179_v8, %v3857_v9  ;;  %v3549_v8 = vld [vmem:[%s6198_s5 + $0x454] sm:$0xf0]  ;;  %v3191_v9 = vld [vmem:[%s6198_s5 + $0x168] sm:$0xf] }
 0x3c1   :  { %2417 = vmatpush.bf16.msrb.mxu2 %v3016_v25  ;;  %2441 = vmatpush.bf16.msra.mxu0 %v3576_v26  ;;  %v3829_v25 = vld [vmem:[%s6198_s5 + $0x684] sm:$0xf0]  ;;  %v3983_v26 = vld [vmem:[%s6198_s5 + $0x84] sm:$0xf] }
 0x3c2   :  { %v3832_v33 = vor.u32 %v4172_v23, %v3829_v25  ;;  %v3076_v34 = vor.u32 %v3983_v26, %v3073_v27  ;;  %v4008_v23 = vld [vmem:[%s6198_s5 + $0x148] sm:$0xf0]  ;;  %v4137_v25 = vld [vmem:[%s6198_s5 + $0x554] sm:$0xf] }
 0x3c3   :  { %2481 = vmatpush.bf16.msra.mxu3 %v3412_v24  ;;  %2457 = vmatpush.bf16.msra.mxu1 %v3744_v38  ;;  %v3664_v24 = vor.u32 %v4130_v16, %v3661_v14  ;;  %v3801_v38 = vld [vmem:[%s6198_s5 + $0x64c] sm:$0xf0]  ;;  %v4144_v16 = vld [vmem:[%s6198_s5 + $0x58c] sm:$0xf]  ;;  %v3717_v14 = vld [vmem:[%s6198_s5 + $0x5a4] sm:$0xf0] }
 0x3c4   :  { %2418 = vmatmul.bf16.vlgmr.msrb.gmra.mxu2 %v5205_v46  ;;  %v3804_v48 = vor.u32 %v4165_v36, %v3801_v38  ;;  %v3493_v36 = vld [vmem:[%s6198_s5 + $0x3e4] sm:$0xf0]  ;;  %v3135_v38 = vld [vmem:[%s6198_s5 + $0xf8] sm:$0xf] }
 0x3c5   :  { %2466 = vmatpush.bf16.msra.mxu2 %v3216_v30  ;;  %2442 = vmatpush.bf16.msra.mxu0 %v3548_v40  ;;  %v3272_v30 = vor.u32 %v4032_v21, %v3269_v22  ;;  %v3443_v40 = vld [vmem:[%s6198_s5 + $0x360] sm:$0xf]  ;;  %v3163_v22 = vld [vmem:[%s6198_s5 + $0x130] sm:$0xf] }
 0x3c6   :  { %v3444_v49 = vor.u32 %v4078_v41, %v3443_v40  ;;  %v3521_v21 = vld [vmem:[%s6198_s5 + $0x41c] sm:$0xf0]  ;;  %v3164_v32 = vor.u32 %v4008_v23, %v3163_v22  ;;  %v3303_v41 = vld [vmem:[%s6198_s5 + $0x248] sm:$0xf]  ;;  %v3611_v23 = vld [vmem:[%s6198_s5 + $0x4b0] sm:$0xf] }
 0x3c7   :  { %2482 = vmatpush.bf16.msra.mxu3 %v3384_v39  ;;  %2458 = vmatpush.bf16.msra.mxu1 %v3716_v51  ;;  %v3636_v39 = vor.u32 %v4123_v28, %v3633_v29  ;;  %v3773_v51 = vld [vmem:[%s6198_s5 + $0x614] sm:$0xf0]  ;;  %v3689_v28 = vld [vmem:[%s6198_s5 + $0x56c] sm:$0xf0]  ;;  %v3331_v29 = vld [vmem:[%s6198_s5 + $0x280] sm:$0xf] }
 0x3c8   :  { %v3776_v62 = vor.u32 %v4158_v50, %v3773_v51  ;;  %v3692_v40 = vor.u32 %v4137_v25, %v3689_v28  ;;  %v2996_v51 = vld [vmem:[%s6199_s6 + $0x6] ss:$8 sm:$0x70] }
 0x3c9   :  { %2467 = vmatpush.bf16.msra.mxu2 %v3188_v44  ;;  %2443 = vmatpush.bf16.msra.mxu0 %v3520_v54  ;;  %v4116_v44 = vld [vmem:[%s6198_s5 + $0x4ac] sm:$0xf]  ;;  %v3415_v54 = vld [vmem:[%s6198_s5 + $0x328] sm:$0xf] }
 0x3ca   :  { %v3416_v63 = vor.u32 %v4071_v55, %v3415_v54  ;;  %v3107_v54 = vld [vmem:[%s6198_s5 + $0xc0] sm:$0xf]  ;;  %v3994_v55 = vld [vmem:[%s6198_s5 + $0xd8] sm:$0xf0] }
 0x3cb   :  { %2483 = vmatpush.bf16.msra.mxu3 %v3356_v53  ;;  %2459 = vmatpush.bf16.msra.mxu1 %v3688_v1  ;;  %v3608_v53 = vor.u32 %v4116_v44, %v3605_v45 }
 0x3cd   :  { %2468 = vmatpush.bf16.msra.mxu2 %v3160_v58  ;;  %2444 = vmatpush.bf16.msra.mxu0 %v3492_v6  ;;  %v4109_v58 = vld [vmem:[%s6198_s5 + $0x474] sm:$0xf]  ;;  %v4064_v6 = vld [vmem:[%s6198_s5 + $0x308] sm:$0xf0] }
 0x3ce   :  { %2460 = vmatmul.bf16.vlgmr.msra.gmra.mxu1 %v5248_v17  ;;  %v3580_v1 = vor.u32 %v4109_v58, %v3577_v59  ;;  %v3388_v12 = vor.u32 %v4064_v6, %v3387_v4  ;;  %v3304_v58 = vor.u32 %v4043_v42, %v3303_v41  ;;  %v4176_v4 = vld [vmem:[%s6198_s5 + $0x688] sm:$0xf0]  ;;  %v3987_v6 = vld [vmem:[%s6198_s5 + $0xa0] sm:$0xf0] }
 0x3cf   :  { %2484 = vmatpush.bf16.msra.mxu3 %v3328_v2  ;;  %2508 = vmatpush.bf16.msrb.mxu1 %v3888_v3  ;;  %v4151_v2 = vld [vmem:[%s6198_s5 + $0x5c4] sm:$0xf]  ;;  %v3745_v3 = vld [vmem:[%s6198_s5 + $0x5dc] sm:$0xf0] }
 0x3d0   :  { %v3748_v11 = vor.u32 %v4151_v2, %v3745_v3  ;;  %v3835_v2 = vld [vmem:[%s6198_s5 + $0x670] sm:$0xf]  ;;  %v3668_v3 = vor.u32 %v4134_v57, %v3667_v56  ;;  %v4148_v56 = vld [vmem:[%s6198_s5 + $0x5a8] sm:$0xf0] }
 0x3d1   :  { %2469 = vmatpush.bf16.msra.mxu2 %v3132_v7  ;;  %2445 = vmatpush.bf16.msra.mxu0 %v3464_v19  ;;  %v4102_v7 = vld [vmem:[%s6198_s5 + $0x43c] sm:$0xf]  ;;  %v4057_v19 = vld [vmem:[%s6198_s5 + $0x2d0] sm:$0xf0] }
 0x3d2   :  { %v3552_v13 = vor.u32 %v4102_v7, %v3549_v8  ;;  %v3639_v7 = vld [vmem:[%s6198_s5 + $0x4e8] sm:$0xf]  ;;  %v4127_v8 = vld [vmem:[%s6198_s5 + $0x500] sm:$0xf0] }
 0x3d3   :  { %2485 = vmatpush.bf16.msra.mxu3 %v3300_v15  ;;  %2509 = vmatpush.bf16.msrb.mxu1 %v3860_v18  ;;  %v3359_v15 = vld [vmem:[%s6198_s5 + $0x2b8] sm:$0xf]  ;;  %v3192_v18 = vor.u32 %v4015_v10, %v3191_v9 }
 0x3d4   :  { %2446 = vmatmul.bf16.vlgmr.msra.gmra.mxu0 %v5285_v37  ;;  %v3360_v26 = vor.u32 %v4057_v19, %v3359_v15  ;;  %v3807_v15 = vld [vmem:[%s6198_s5 + $0x638] sm:$0xf]  ;;  %v4169_v19 = vld [vmem:[%s6198_s5 + $0x650] sm:$0xf0] }
 0x3d5   :  { %2470 = vmatpush.bf16.msra.mxu2 %v3104_v20  ;;  %2494 = vmatpush.bf16.msrb.mxu0 %v3664_v24  ;;  %v4095_v20 = vld [vmem:[%s6198_s5 + $0x404] sm:$0xf]  ;;  %v3720_v24 = vor.u32 %v4144_v16, %v3717_v14  ;;  %v3247_v16 = vld [vmem:[%s6198_s5 + $0x1d8] sm:$0xf]  ;;  %v4029_v14 = vld [vmem:[%s6198_s5 + $0x1f0] sm:$0xf0] }
 0x3d6   :  { %v3524_v27 = vor.u32 %v4095_v20, %v3521_v21  ;;  %v3051_v20 = vld [vmem:[%s6198_s5 + $0x50] sm:$0xf]  ;;  %v3980_v21 = vld [vmem:[%s6198_s5 + $0x68] sm:$0xf0]  ;;  %v3248_v25 = vor.u32 %v4029_v14, %v3247_v16  ;;  %v3471_v16 = vld [vmem:[%s6198_s5 + $0x398] sm:$0xf] }
 0x3d7   :  { %2486 = vmatpush.bf16.msra.mxu3 %v3272_v30  ;;  %2510 = vmatpush.bf16.msrb.mxu1 %v3832_v33  ;;  %v4050_v30 = vld [vmem:[%s6198_s5 + $0x298] sm:$0xf0]  ;;  %v3891_v33 = vld [vmem:[%s6198_s5 + $0x6e0] sm:$0xf]  ;;  %v4085_v14 = vld [vmem:[%s6198_s5 + $0x3b0] sm:$0xf0] }
 0x3d8   :  { %v3332_v44 = vor.u32 %v4050_v30, %v3331_v29  ;;  %v3052_v29 = vor.u32 %v3980_v21, %v3051_v20  ;;  %v3779_v30 = vld [vmem:[%s6198_s5 + $0x600] sm:$0xf]  ;;  %v3472_v21 = vor.u32 %v4085_v14, %v3471_v16 }
 0x3d9   :  { %2471 = vmatpush.bf16.msra.mxu2 %v3076_v34  ;;  %2495 = vmatpush.bf16.msrb.mxu0 %v3636_v39  ;;  %v4190_v34 = vld [vmem:[%s6198_s5 + $0x6f8] sm:$0xf0]  ;;  %v4001_v39 = vld [vmem:[%s6198_s5 + $0x110] sm:$0xf0] }
 0x3da   :  { %v3892_v45 = vor.u32 %v4190_v34, %v3891_v33  ;;  %v3136_v50 = vor.u32 %v4001_v39, %v3135_v38  ;;  %v4162_v33 = vld [vmem:[%s6198_s5 + $0x618] sm:$0xf0]  ;;  %v3023_v34 = vld [vmem:[%s6198_s5 + $0x18] sm:$0xf]  ;;  %v4113_v38 = vld [vmem:[%s6198_s5 + $0x490] sm:$0xf0] }
 0x3db   :  { %2487 = vmatpush.bf16.msra.mxu3 %v3244_v47  ;;  %2511 = vmatpush.bf16.msrb.mxu1 %v3804_v48  ;;  %v4183_v47 = vld [vmem:[%s6198_s5 + $0x6c0] sm:$0xf0]  ;;  %v3780_v41 = vor.u32 %v4162_v33, %v3779_v30 }
 0x3dc   :  { %v2995_v48 = vld [vmem:[%s6199_s6 + $0x6] ss:$8 sm:$0xf]  ;;  %v3864_v59 = vor.u32 %v4183_v47, %v3863_v43 }
 0x3dd   :  { %2472 = vmatpush.bf16.msra.mxu2 %v3048_v52  ;;  %2496 = vmatpush.bf16.msrb.mxu0 %v3608_v53  ;;  %v4081_v52 = vld [vmem:[%s6198_s5 + $0x394] sm:$0xf]  ;;  %v3465_v53 = vld [vmem:[%s6198_s5 + $0x3ac] sm:$0xf0]  ;;  %v6067_v60 = vor.u32 %v2996_v51, %v2995_v48  ;;  %v4155_v47 = vld [vmem:[%s6198_s5 + $0x5e0] sm:$0xf0] }
 0x3de   :  { %2488 = vmatmul.bf16.vlgmr.msra.gmra.mxu3 %v5183_v31 }
 0x3df   :  { %2536 = vmatpush.bf16.msrb.mxu3 %v3444_v49  ;;  %2512 = vmatpush.bf16.msrb.mxu1 %v3776_v62  ;;  %v3496_v49 = vor.u32 %v4088_v35, %v3493_v36  ;;  %v3468_v62 = vor.u32 %v4081_v52, %v3465_v53  ;;  %v1020_v10 = vperm.slane %v6067_v60, 0  ;;  %v3973_v35 = vld [vmem:[%s6198_s5 + $0x30] sm:$0xf0]  ;;  %v3583_v36 = vld [vmem:[%s6198_s5 + $0x478] sm:$0xf] }
 0x3e0   :  { %v3024_v42 = vor.u32 %v3973_v35, %v3023_v34 }
 0x3e1   :  { %2473 = vmatpush.bf16.msra.mxu2 %v3020_v0  ;;  %2497 = vmatpush.bf16.msrb.mxu0 %v3580_v1  ;;  %v3275_v0 = vld [vmem:[%s6198_s5 + $0x210] sm:$0xf]  ;;  %v4036_v1 = vld [vmem:[%s6198_s5 + $0x228] sm:$0xf0]  ;;  %v2209_v9 = vpop.f32.mrf.mxu3 }
 0x3e3   :  { %2537 = vmatpush.bf16.msrb.mxu3 %v3416_v63  ;;  %2513 = vmatpush.bf16.msrb.mxu1 %v3748_v11  ;;  %v3108_v63 = vor.u32 %v3994_v55, %v3107_v54  ;;  %v3276_v11 = vor.u32 %v4036_v1, %v3275_v0 }
 0x3e4   :  { %2474 = vmatmul.bf16.vlgmr.msra.gmra.mxu2 %v5205_v46 }
 0x3e5   :  { %2522 = vmatpush.bf16.msrb.mxu2 %v3220_v5  ;;  %2498 = vmatpush.bf16.msrb.mxu0 %v3552_v13  ;;  %v3079_v5 = vld [vmem:[%s6198_s5 + $0x88] sm:$0xf] }
 0x3e6   :  { %v2195_v61 = vpop.f32.mrf.mxu2  ;;  %v3080_v13 = vor.u32 %v3987_v6, %v3079_v5  ;;  %v4092_v6 = vld [vmem:[%s6198_s5 + $0x3e8] sm:$0xf0] }
 0x3e7   :  { %2538 = vmatpush.bf16.msrb.mxu3 %v3388_v12  ;;  %2514 = vmatpush.bf16.msrb.mxu1 %v3720_v24  ;;  %v3836_v12 = vor.u32 %v4176_v4, %v3835_v2  ;;  %v4120_v24 = vld [vmem:[%s6198_s5 + $0x4c8] sm:$0xf0]  ;;  %v3695_v2 = vld [vmem:[%s6198_s5 + $0x558] sm:$0xf] }
 0x3e9   :  { %2523 = vmatpush.bf16.msrb.mxu2 %v3192_v18  ;;  %2499 = vmatpush.bf16.msrb.mxu0 %v3524_v27  ;;  %v3640_v18 = vor.u32 %v4127_v8, %v3639_v7  ;;  %v3808_v27 = vor.u32 %v4169_v19, %v3807_v15  ;;  %v2211_v43 = vpop.f32.mrf.mxu3 }
 0x3eb   :  { %2539 = vmatpush.bf16.msrb.mxu3 %v3360_v26  ;;  %2515 = vmatpush.bf16.msrb.mxu1 %v3692_v40  ;;  %v2237_v22 = vpop.f32.mrf.mxu1  ;;  %v2196_v26 = vadd.f32 %v2195_v61, %v1020_v10  ;;  %v4099_v61 = vld [vmem:[%s6198_s5 + $0x420] sm:$0xf0] }
 0x3ed   :  { %2524 = vmatpush.bf16.msrb.mxu2 %v3164_v32  ;;  %2500 = vmatpush.bf16.msrb.mxu0 %v3496_v49  ;;  %v3612_v32 = vor.u32 %v4120_v24, %v3611_v23  ;;  %v2210_v40 = vadd.f32 %v2209_v9, %v2196_v26  ;;  %v3555_v49 = vld [vmem:[%s6198_s5 + $0x440] sm:$0xf] }
 0x3ee   :  { %2516 = vmatmul.bf16.vlgmr.msrb.gmra.mxu1 %v5248_v17  ;;  %v2197_v28 = vpop.f32.mrf.mxu2 }
 0x3ef   :  { %2540 = vmatpush.bf16.msrb.mxu3 %v3332_v44  ;;  %2564 = vmatpush.bf16.msra.mxu1 %v3892_v45  ;;  %v3584_v44 = vor.u32 %v4113_v38, %v3583_v36  ;;  %v3751_v45 = vld [vmem:[%s6198_s5 + $0x5c8] sm:$0xf]  ;;  %v2198_v53 = vadd.f32 %v2197_v28, %v1020_v10 }
 0x3f0   :  { %v3752_v52 = vor.u32 %v4155_v47, %v3751_v45  ;;  %v1022_v45 = vperm.slane %v6067_v60, 2 }
 0x3f1   :  { %2525 = vmatpush.bf16.msrb.mxu2 %v3136_v50  ;;  %2501 = vmatpush.bf16.msrb.mxu0 %v3468_v62  ;;  %v2223_v39 = vpop.f32.mrf.mxu0  ;;  %v4106_v50 = vld [vmem:[%s6198_s5 + $0x458] sm:$0xf0]  ;;  %v2212_v0 = vadd.f32 %v2211_v43, %v2198_v53  ;;  %v2265_v7 = vpop.f32.mrf.mxu3 }
 0x3f2   :  { %v2224_v48 = vadd.f32 %v2223_v39, %v2210_v40  ;;  %v3556_v55 = vor.u32 %v4106_v50, %v3555_v49 }
 0x3f3   :  { %2541 = vmatpush.bf16.msrb.mxu3 %v3304_v58  ;;  %2565 = vmatpush.bf16.msra.mxu1 %v3864_v59  ;;  %v2239_v51 = vpop.f32.mrf.mxu1  ;;  %v1021_v58 = vperm.slane %v6067_v60, 1  ;;  %v3527_v59 = vld [vmem:[%s6198_s5 + $0x408] sm:$0xf] }
 0x3f4   :  { %2502 = vmatmul.bf16.vlgmr.msrb.gmra.mxu0 %v5285_v37  ;;  %v2238_v57 = vadd.f32 %v2237_v22, %v2224_v48  ;;  %v3528_v1 = vor.u32 %v4099_v61, %v3527_v59 }
 0x3f5   :  { %2526 = vmatpush.bf16.msrb.mxu2 %v3108_v63  ;;  %2550 = vmatpush.bf16.msra.mxu0 %v3668_v3  ;;  %v4141_v3 = vld [vmem:[%s6198_s5 + $0x570] sm:$0xf0] }
 0x3f6   :  { %v2578_v4 = vsub.f32 0.0, %v2238_v57  ;;  %v3696_v9 = vor.u32 %v4141_v3, %v3695_v2 }
 0x3f7   :  { %2542 = vmatpush.bf16.msrb.mxu3 %v3276_v11  ;;  %2566 = vmatpush.bf16.msra.mxu1 %v3836_v12  ;;  %v2251_v54 = vpop.f32.mrf.mxu2 }
 0x3f8   :  { %v2252_v5 = vadd.f32 %v2251_v54, %v1021_v58  ;;  %v2592_v11 = vmul.f32 1.442695, %v2578_v4 }
 0x3f9   :  { %2527 = vmatpush.bf16.msrb.mxu2 %v3080_v13  ;;  %2551 = vmatpush.bf16.msra.mxu0 %v3640_v18  ;;  %v2225_v62 = vpop.f32.mrf.mxu0  ;;  %v2267_v26 = vpop.f32.mrf.mxu3 }
 0x3fa   :  { %v2226_v8 = vadd.f32 %v2225_v62, %v2212_v0  ;;  %v2266_v13 = vadd.f32 %v2265_v7, %v2252_v5  ;;  %4194 = vpow2.f32 %v2592_v11 }
 0x3fb   :  { %2543 = vmatpush.bf16.msrb.mxu3 %v3248_v25  ;;  %2567 = vmatpush.bf16.msra.mxu1 %v3808_v27  ;;  %v2293_v12 = vpop.f32.mrf.mxu1 }
 0x3fc   :  { %v2240_v15 = vadd.f32 %v2239_v51, %v2226_v8 }
 0x3fd   :  { %2528 = vmatpush.bf16.msrb.mxu2 %v3052_v29  ;;  %2552 = vmatpush.bf16.msra.mxu0 %v3612_v32 }
 0x3fe   :  { %2544 = vmatmul.bf16.vlgmr.msrb.gmra.mxu3 %v5183_v31  ;;  %v3723_v31 = vld [vmem:[%s6198_s5 + $0x590] sm:$0xf]  ;;  %v2585_v24 = vsub.f32 0.0, %v2240_v15 }
 0x3ff   :  { %2568 = vmatpush.bf16.msra.mxu1 %v3780_v41  ;;  %v3724_v63 = vor.u32 %v4148_v56, %v3723_v31  ;;  %v2253_v18 = vpop.f32.mrf.mxu2 }
 0x400   :  { %v2254_v22 = vadd.f32 %v2253_v18, %v1021_v58  ;;  %v2606_v29 = vmul.f32 1.442695, %v2585_v24  ;;  %v4195_v32 = vpop.eup %4194 }
 0x401   :  { %2529 = vmatpush.bf16.msrb.mxu2 %v3024_v42  ;;  %2553 = vmatpush.bf16.msra.mxu0 %v3584_v44  ;;  %v2279_v19 = vpop.f32.mrf.mxu0  ;;  %v2620_v36 = vadd.f32 1.0, %v4195_v32 }
 0x402   :  { %v2280_v20 = vadd.f32 %v2279_v19, %v2266_v13  ;;  %v2268_v28 = vadd.f32 %v2267_v26, %v2254_v22 }
 0x403   :  { %2569 = vmatpush.bf16.msra.mxu1 %v3752_v52  ;;  %v2295_v34 = vpop.f32.mrf.mxu1 }
 0x404   :  { %2530 = vmatmul.bf16.vlgmr.msrb.gmra.mxu2 %v5205_v46  ;;  %v3499_v46 = vld [vmem:[%s6198_s5 + $0x3d0] sm:$0xf]  ;;  %v2294_v23 = vadd.f32 %v2293_v12, %v2280_v20  ;;  %s4276_s5 = smov [#allocation2]  }
 0x405   :  { %2554 = vmatpush.bf16.msra.mxu0 %v3556_v55  ;;  %v3500_v10 = vor.u32 %v4092_v6, %v3499_v46  ;;  %s2669_s30 = sshll.u32 %s4276_s5, 4  ;;  %s2670_s30 = int_to_ptr.vmem [resolvable:$true] %s2669_s30 }
 0x406   :  { %v2579_v25 = vsub.f32 0.0, %v2294_v23 }
 0x407   :  { %2570 = vmatpush.bf16.msra.mxu1 %v3724_v63  ;;  %v2307_v41 = vpop.f32.mrf.mxu2 }
 0x408   :  { %v2594_v27 = vmul.f32 1.442695, %v2579_v25  ;;  %v2308_v51 = vadd.f32 %v2307_v41, %v1022_v45 }
 0x409   :  { %2555 = vmatpush.bf16.msra.mxu0 %v3528_v1  ;;  %v2281_v30 = vpop.f32.mrf.mxu0  ;;  %v1023_v1 = vperm.slane %v6067_v60, 3 }
 0x40a   :  { %4196 = vpow2.f32 %v2594_v27  ;;  %v2282_v33 = vadd.f32 %v2281_v30, %v2268_v28 }
 0x40b   :  { %2571 = vmatpush.bf16.msra.mxu1 %v3696_v9  ;;  %4198 = vpow2.f32 %v2606_v29  ;;  %v2349_v52 = vpop.f32.mrf.mxu1 }
 0x40c   :  { %v2296_v35 = vadd.f32 %v2295_v34, %v2282_v33  ;;  %4200 = vrcp.f32 %v2620_v36 }
 0x40d   :  { %2556 = vmatpush.bf16.msra.mxu0 %v3500_v10 }
 0x40e   :  { %2572 = vmatmul.bf16.vlgmr.msra.gmra.mxu1 %v5248_v17  ;;  %v2586_v38 = vsub.f32 0.0, %v2296_v35 }
 0x40f   :  { %v2309_v53 = vpop.f32.mrf.mxu2 }
 0x410   :  { %v4197_v39 = vpop.eup %4196  ;;  %v2608_v40 = vmul.f32 1.442695, %v2586_v38  ;;  %v2310_v61 = vadd.f32 %v2309_v53, %v1022_v45  ;;  %v1024_v45 = vperm.slane %v6067_v60, 4 }
 0x411   :  { %2557 = vmatpush.bf16.msra.mxu0 %v3472_v21  ;;  %v2621_v17 = vadd.f32 1.0, %v4197_v39  ;;  %v4199_v42 = vpop.eup %4198  ;;  %v2335_v54 = vpop.f32.mrf.mxu0 }
 0x412   :  { %4202 = vpow2.f32 %v2608_v40  ;;  %v2627_v43 = vadd.f32 1.0, %v4199_v42  ;;  %v4201_v44 = vpop.eup %4200 }
 0x413   :  { %4204 = vrcp.f32 %v2621_v17  ;;  %v2351_v0 = vpop.f32.mrf.mxu1 }
 0x414   :  { %2558 = vmatmul.bf16.vlgmr.msra.gmra.mxu0 %v5285_v37  ;;  %v2321_v37 = vpop.f32.mrf.mxu3  ;;  %4206 = vrcp.f32 %v2627_v43 }
 0x415   :  { %v2322_v55 = vadd.f32 %v2321_v37, %v2308_v51 }
 0x417   :  { %v2336_v57 = vadd.f32 %v2335_v54, %v2322_v55 }
 0x418   :  { %v4203_v47 = vpop.eup %4202 }
 0x419   :  { %v4205_v48 = vpop.eup %4204  ;;  %v2628_v49 = vadd.f32 1.0, %v4203_v47  ;;  %v2350_v63 = vadd.f32 %v2349_v52, %v2336_v57  ;;  %v2337_v2 = vpop.f32.mrf.mxu0  ;;  %v1025_v57 = vperm.slane %v6067_v60, 5 }
 0x41a   :  { %v2648_v50 = vpack.c.bf16 %v4205_v48, %v4201_v44  ;;  %v4207_v31 = vpop.eup %4206 }
 0x41b   :  { %4208 = vrcp.f32 %v2628_v49  ;;  %v2580_v4 = vsub.f32 0.0, %v2350_v63 }
 0x41c   :  { %2656 = vst [vmem:[#allocation2] sm:$0xff] %v2648_v50  ;;  %v2323_v59 = vpop.f32.mrf.mxu3 }
 0x41d   :  { %v2324_v3 = vadd.f32 %v2323_v59, %v2310_v61  ;;  %v2596_v7 = vmul.f32 1.442695, %v2580_v4 }
 0x41f   :  { %v2338_v46 = vadd.f32 %v2337_v2, %v2324_v3  ;;  %4210 = vpow2.f32 %v2596_v7 }
 0x421   :  { %v4209_v56 = vpop.eup %4208  ;;  %v2352_v10 = vadd.f32 %v2351_v0, %v2338_v46 }
 0x422   :  { %v2652_v58 = vpack.c.bf16 %v4209_v56, %v4207_v31 }
 0x423   :  { %v2587_v15 = vsub.f32 0.0, %v2352_v10 }
 0x424   :  { %2661 = vst [vmem:[#allocation2 + $0x1c] sm:$0xff] %v2652_v58  ;;  %v2377_v6 = vpop.f32.mrf.mxu3 }
 0x425   :  { %v2610_v22 = vmul.f32 1.442695, %v2587_v15  ;;  %v4211_v24 = vpop.eup %4210 }
 0x426   :  { %v2622_v28 = vadd.f32 1.0, %v4211_v24 }
 0x427   :  { %v2363_v62 = vpop.f32.mrf.mxu2 }
 0x428   :  { %v2364_v5 = vadd.f32 %v2363_v62, %v1023_v1 }
 0x42a   :  { %v2378_v9 = vadd.f32 %v2377_v6, %v2364_v5 }
 0x42b   :  { %v2405_v8 = vpop.f32.mrf.mxu1 }
 0x42c   :  { %v2379_v19 = vpop.f32.mrf.mxu3 }
 0x42f   :  { %v2365_v11 = vpop.f32.mrf.mxu2 }
 0x430   :  { %v2366_v16 = vadd.f32 %v2365_v11, %v1023_v1 }
 0x431   :  { %v2391_v12 = vpop.f32.mrf.mxu0 }
 0x432   :  { %v2392_v13 = vadd.f32 %v2391_v12, %v2378_v9  ;;  %v2380_v21 = vadd.f32 %v2379_v19, %v2366_v16 }
 0x433   :  { %v2407_v26 = vpop.f32.mrf.mxu1 }
 0x434   :  { %v2406_v14 = vadd.f32 %v2405_v8, %v2392_v13 }
 0x436   :  { %v2581_v18 = vsub.f32 0.0, %v2406_v14 }
 0x438   :  { %v2598_v20 = vmul.f32 1.442695, %v2581_v18 }
 0x439   :  { %v2393_v23 = vpop.f32.mrf.mxu0 }
 0x43a   :  { %4212 = vpow2.f32 %v2598_v20  ;;  %v2394_v25 = vadd.f32 %v2393_v23, %v2380_v21 }
 0x43b   :  { %4214 = vpow2.f32 %v2610_v22 }
 0x43c   :  { %v2408_v27 = vadd.f32 %v2407_v26, %v2394_v25  ;;  %4216 = vrcp.f32 %v2622_v28  ;;  %v1026_v28 = vperm.slane %v6067_v60, 6 }
 0x43e   :  { %v2588_v29 = vsub.f32 0.0, %v2408_v27 }
 0x440   :  { %v4213_v30 = vpop.eup %4212  ;;  %v2612_v32 = vmul.f32 1.442695, %v2588_v29 }
 0x441   :  { %v2623_v33 = vadd.f32 1.0, %v4213_v30  ;;  %v4215_v34 = vpop.eup %4214  ;;  %v2433_v47 = vpop.f32.mrf.mxu3 }
 0x442   :  { %4218 = vpow2.f32 %v2612_v32  ;;  %v2629_v35 = vadd.f32 1.0, %v4215_v34  ;;  %v4217_v36 = vpop.eup %4216 }
 0x443   :  { %4220 = vrcp.f32 %v2623_v33 }
 0x444   :  { %4222 = vrcp.f32 %v2629_v35 }
 0x447   :  { %v2419_v43 = vpop.f32.mrf.mxu2 }
 0x448   :  { %v4219_v38 = vpop.eup %4218  ;;  %v2420_v37 = vadd.f32 %v2419_v43, %v1024_v45 }
 0x449   :  { %v4221_v39 = vpop.eup %4220  ;;  %v2630_v40 = vadd.f32 1.0, %v4219_v38  ;;  %v2435_v53 = vpop.f32.mrf.mxu3 }
 0x44a   :  { %v2649_v17 = vpack.c.bf16 %v4221_v39, %v4217_v36  ;;  %v4223_v41 = vpop.eup %4222  ;;  %v2434_v51 = vadd.f32 %v2433_v47, %v2420_v37 }
 0x44b   :  { %4224 = vrcp.f32 %v2630_v40  ;;  %v2461_v48 = vpop.f32.mrf.mxu1 }
 0x44c   :  { %2657 = vst [vmem:[#allocation2 + $0x8] sm:$0xff] %v2649_v17 }
 0x44f   :  { %v2421_v49 = vpop.f32.mrf.mxu2 }
 0x450   :  { %v2422_v54 = vadd.f32 %v2421_v49, %v1024_v45 }
 0x451   :  { %v4225_v42 = vpop.eup %4224  ;;  %v2447_v50 = vpop.f32.mrf.mxu0 }
 0x452   :  { %v2653_v44 = vpack.c.bf16 %v4225_v42, %v4223_v41  ;;  %v2448_v52 = vadd.f32 %v2447_v50, %v2434_v51  ;;  %v2436_v59 = vadd.f32 %v2435_v53, %v2422_v54 }
 0x453   :  { %v2463_v56 = vpop.f32.mrf.mxu1 }
 0x454   :  { %2662 = vst [vmem:[#allocation2 + $0x24] sm:$0xff] %v2653_v44  ;;  %v2462_v31 = vadd.f32 %v2461_v48, %v2448_v52 }
 0x456   :  { %v2582_v61 = vsub.f32 0.0, %v2462_v31 }
 0x458   :  { %v2600_v1 = vmul.f32 1.442695, %v2582_v61 }
 0x459   :  { %v2449_v58 = vpop.f32.mrf.mxu0 }
 0x45a   :  { %v2450_v63 = vadd.f32 %v2449_v58, %v2436_v59  ;;  %4226 = vpow2.f32 %v2600_v1 }
 0x45c   :  { %v2464_v4 = vadd.f32 %v2463_v56, %v2450_v63 }
 0x45e   :  { %v2589_v9 = vsub.f32 0.0, %v2464_v4 }
 0x460   :  { %v2614_v16 = vmul.f32 1.442695, %v2589_v9  ;;  %v4227_v15 = vpop.eup %4226 }
 0x461   :  { %v2489_v0 = vpop.f32.mrf.mxu3  ;;  %v2624_v21 = vadd.f32 1.0, %v4227_v15 }
 0x467   :  { %v2475_v55 = vpop.f32.mrf.mxu2 }
 0x468   :  { %v2476_v62 = vadd.f32 %v2475_v55, %v1025_v57 }
 0x469   :  { %v2491_v11 = vpop.f32.mrf.mxu3 }
 0x46a   :  { %v2490_v3 = vadd.f32 %v2489_v0, %v2476_v62 }
 0x46b   :  { %v2517_v2 = vpop.f32.mrf.mxu1 }
 0x46f   :  { %v2477_v5 = vpop.f32.mrf.mxu2 }
 0x470   :  { %v2478_v7 = vadd.f32 %v2477_v5, %v1025_v57 }
 0x471   :  { %v2503_v46 = vpop.f32.mrf.mxu0 }
 0x472   :  { %v2504_v6 = vadd.f32 %v2503_v46, %v2490_v3  ;;  %v2492_v13 = vadd.f32 %v2491_v11, %v2478_v7 }
 0x473   :  { %v2519_v19 = vpop.f32.mrf.mxu1 }
 0x474   :  { %v2518_v8 = vadd.f32 %v2517_v2, %v2504_v6 }
 0x476   :  { %v2583_v10 = vsub.f32 0.0, %v2518_v8 }
 0x478   :  { %v2602_v12 = vmul.f32 1.442695, %v2583_v10 }
 0x479   :  { %v2505_v14 = vpop.f32.mrf.mxu0 }
 0x47a   :  { %4228 = vpow2.f32 %v2602_v12  ;;  %v2506_v18 = vadd.f32 %v2505_v14, %v2492_v13 }
 0x47b   :  { %4230 = vpow2.f32 %v2614_v16 }
 0x47c   :  { %v2520_v20 = vadd.f32 %v2519_v19, %v2506_v18  ;;  %4232 = vrcp.f32 %v2624_v21 }
 0x47e   :  { %v2590_v22 = vsub.f32 0.0, %v2520_v20 }
 0x480   :  { %v4229_v23 = vpop.eup %4228  ;;  %v2616_v24 = vmul.f32 1.442695, %v2590_v22 }
 0x481   :  { %v2625_v25 = vadd.f32 1.0, %v4229_v23  ;;  %v4231_v26 = vpop.eup %4230  ;;  %v2545_v38 = vpop.f32.mrf.mxu3 }
 0x482   :  { %4234 = vpow2.f32 %v2616_v24  ;;  %v2631_v29 = vadd.f32 1.0, %v4231_v26  ;;  %v4233_v30 = vpop.eup %4232 }
 0x483   :  { %4236 = vrcp.f32 %v2625_v25 }
 0x484   :  { %4238 = vrcp.f32 %v2631_v29 }
 0x487   :  { %v2531_v27 = vpop.f32.mrf.mxu2 }
 0x488   :  { %v4235_v32 = vpop.eup %4234  ;;  %v2532_v35 = vadd.f32 %v2531_v27, %v1026_v28 }
 0x489   :  { %v4237_v33 = vpop.eup %4236  ;;  %v2632_v34 = vadd.f32 1.0, %v4235_v32  ;;  %v2547_v48 = vpop.f32.mrf.mxu3 }
 0x48a   :  { %v2650_v36 = vpack.c.bf16 %v4237_v33, %v4233_v30  ;;  %v2546_v40 = vadd.f32 %v2545_v38, %v2532_v35  ;;  %v4239_v43 = vpop.eup %4238 }
 0x48b   :  { %4240 = vrcp.f32 %v2632_v34  ;;  %v2573_v39 = vpop.f32.mrf.mxu1 }
 0x48c   :  { %2658 = vst [vmem:[#allocation2 + $0x10] sm:$0xff] %v2650_v36 }
 0x48f   :  { %v2533_v17 = vpop.f32.mrf.mxu2 }
 0x490   :  { %v2534_v45 = vadd.f32 %v2533_v17, %v1026_v28 }
 0x491   :  { %v2559_v41 = vpop.f32.mrf.mxu0  ;;  %v4241_v44 = vpop.eup %4240 }
 0x492   :  { %v2560_v42 = vadd.f32 %v2559_v41, %v2546_v40  ;;  %v2654_v47 = vpack.c.bf16 %v4241_v44, %v4239_v43  ;;  %v2548_v50 = vadd.f32 %v2547_v48, %v2534_v45 }
 0x493   :  { %v2575_v53 = vpop.f32.mrf.mxu1 }
 0x494   :  { %v2574_v60 = vadd.f32 %v2573_v39, %v2560_v42  ;;  %2663 = vst [vmem:[#allocation2 + $0x2c] sm:$0xff] %v2654_v47 }
 0x496   :  { %v2584_v37 = vsub.f32 0.0, %v2574_v60 }
 0x498   :  { %v2604_v49 = vmul.f32 1.442695, %v2584_v37 }
 0x499   :  { %v2561_v51 = vpop.f32.mrf.mxu0 }
 0x49a   :  { %4242 = vpow2.f32 %v2604_v49  ;;  %v2562_v52 = vadd.f32 %v2561_v51, %v2548_v50 }
 0x49c   :  { %v2576_v54 = vadd.f32 %v2575_v53, %v2562_v52 }
 0x49e   :  { %v2591_v55 = vsub.f32 0.0, %v2576_v54 }
 0x4a0   :  { %v4243_v31 = vpop.eup %4242  ;;  %v2618_v56 = vmul.f32 1.442695, %v2591_v55 }
 0x4a1   :  { %v2626_v57 = vadd.f32 1.0, %v4243_v31 }
 0x4a2   :  { %4244 = vpow2.f32 %v2618_v56 }
 0x4a3   :  { %4246 = vrcp.f32 %v2626_v57 }
 0x4a8   :  { %v4245_v58 = vpop.eup %4244 }
 0x4a9   :  { %v4247_v59 = vpop.eup %4246  ;;  %v2633_v61 = vadd.f32 1.0, %v4245_v58 }
 0x4aa   :  { %v2651_v62 = vpack.c.bf16 %v4247_v59, %v4247_v59 }
 0x4ab   :  { %4248 = vrcp.f32 %v2633_v61 }
 0x4ac   :  { %2660 = vst.msk [vmem:[#allocation2 + $0x18] sm:$0xf] %vm2659_vm3, %v2651_v62 }
 0x4b1   :  { %v4249_v63 = vpop.eup %4248 }
 0x4b2   :  { %v2655_v0 = vpack.c.bf16 %v4249_v63, %v4249_v63 }
 0x4b4   :  { %2664 = vst.msk [vmem:[#allocation2 + $0x34] sm:$0xf] %vm2659_vm3, %v2655_v0 }
 0x4b5   :  { %2677 = dma.vmem_to_hbm [thread:$0]  %s2670_s30, 896, %s2672_s9, [#allocation3], %s4277_s10, %s4277_s10, %s4278_s11  }
 0x4b6   :  { %4274 = dma.done.wait [#allocation3], 896  }
 0x4b7   :  { %4275 = vsyncadd [#allocation3], 4294966400 }
 0x4b8   :  { %2682 = vsyncpa [#allocation3], 1 }

</bundles_post_ra>
